<compile_context>
chip_gen: v6e
topology: v6e:2x2x1
jax: 0.10.0
libtpu: 0.0.40
codegen_flags: <defaults>
</compile_context>

<pallas_src>
import numpy as np
import jax
import jax.numpy as jnp
from jax import lax
from jax.experimental import pallas as pl
from jax.experimental.pallas import tpu as pltpu

# ---- module config (cfg.m from the original code base) ----------------------
CFG_M = 32          # per-proposal feature size (cfg.m)
LANG_SIZE = 32      # lang_size
HIDDEN_SIZE = 32    # hidden_size
BATCH_SIZE = 2      # batch_size
BN_EPS = 1e-5
C_IN = LANG_SIZE + CFG_M
H = HIDDEN_SIZE


def _round_up(x, m):
    return (x + m - 1) // m * m


def _vmem_budget_bytes():
    """Per-device VMEM budget for the resident (fused) plan."""
    phys = 64 << 20                      # conservative default = v7x physical VMEM
    try:
        info = pltpu.get_tpu_info()
        phys = int(getattr(info, "vmem_capacity_bytes", phys) or phys)
    except Exception:
        pass
    return (phys * 3) // 4               # leave headroom for compiler/spill


def _fused_vmem_bytes(n_pad):
    """Rough footprint of the fused kernel: x(bf16) + several (H,n) f32 temps."""
    return n_pad * (2 * C_IN + 8 * 4 * H + 4) + (1 << 20)


# =============================================================================
# Fused single-call kernel (activations VMEM-resident, BN computed in-kernel)
# =============================================================================
def _make_fused_kernel(n_pad, n_valid):
    inv_n = 1.0 / float(max(n_valid, 1))

    def kernel(x_ref, w1_ref, b1_ref, w2_ref, b2_ref, w3_ref, b3_ref,
               g1_ref, be1_ref, g2_ref, be2_ref, w4_ref, b4_ref, out_ref):
        x = x_ref[...]                                            # (n_pad, C_IN) bf16
        # fuse: Conv1d(C_in->H) + ReLU   (NT matmul: contract both last dims)
        h1 = lax.dot_general(w1_ref[...], x, (((1,), (1,)), ((), ())),
                             preferred_element_type=jnp.float32) + b1_ref[...]
        h1 = jnp.maximum(h1, 0.0)                                 # (H, n_pad) f32
        # match[0..1]: Conv1d(H->H) + ReLU
        h2 = jnp.dot(w2_ref[...], h1.astype(jnp.bfloat16),
                     preferred_element_type=jnp.float32) + b2_ref[...]
        h2 = jnp.maximum(h2, 0.0)                                 # (H, n_pad) f32

        # lane-padding mask (padding beyond n must not pollute BN batch stats)
        lane = lax.broadcasted_iota(jnp.int32, (1, n_pad), 1)
        mask = (lane < n_valid).astype(jnp.float32)

        # match[2]: training-mode BatchNorm1d (masked single-pass stats)
        hm = h2 * mask
        mu1 = jnp.sum(hm, axis=-1, keepdims=True) * inv_n
        var1 = jnp.maximum(
            jnp.sum(hm * h2, axis=-1, keepdims=True) * inv_n - mu1 * mu1, 0.0)
        a1 = g1_ref[...] * lax.rsqrt(var1 + BN_EPS)
        c1 = be1_ref[...] - a1 * mu1
        h2n = (a1 * h2 + c1).astype(jnp.bfloat16)

        # match[3..4]: Conv1d(H->H) + ReLU
        h3 = jnp.dot(w3_ref[...], h2n,
                     preferred_element_type=jnp.float32) + b3_ref[...]
        h3 = jnp.maximum(h3, 0.0)                                 # (H, n_pad) f32

        # match[5]: BatchNorm1d
        hm3 = h3 * mask
        mu2 = jnp.sum(hm3, axis=-1, keepdims=True) * inv_n
        var2 = jnp.maximum(
            jnp.sum(hm3 * h3, axis=-1, keepdims=True) * inv_n - mu2 * mu2, 0.0)
        a2 = g2_ref[...] * lax.rsqrt(var2 + BN_EPS)
        c2 = be2_ref[...] - a2 * mu2
        h3n = a2 * h3 + c2

        # match[6]: Conv1d(H->1) epilogue, lane-dense (1, n_pad) output on MXU
        out_ref[...] = jnp.dot(w4_ref[...], h3n,
                               preferred_element_type=jnp.float32) + b4_ref[...]

    return kernel


# =============================================================================
# Tiled fallback kernels (large N): 2 pallas_calls + one XLA dot
# =============================================================================
def _make_stage1_kernel(tn, n_valid):
    """fuse Conv(C_in->H)+ReLU, match[0..1] Conv(H->H)+ReLU, BN1 partial stats."""
    def kernel(x_ref, w1_ref, b1_ref, w2_ref, b2_ref, h2_ref, stat_ref):
        x = x_ref[...]                                            # (tn, C_IN) bf16
        h1 = lax.dot_general(w1_ref[...], x, (((1,), (1,)), ((), ())),
                             preferred_element_type=jnp.float32) + b1_ref[...]
        h1 = jnp.maximum(h1, 0.0)
        h2 = jnp.dot(w2_ref[...], h1.astype(jnp.bfloat16),
                     preferred_element_type=jnp.float32) + b2_ref[...]
        h2 = jnp.maximum(h2, 0.0)                                 # (H, tn) f32
        h2_ref[...] = h2.astype(jnp.bfloat16)
        base = pl.program_id(0) * tn
        lane = lax.broadcasted_iota(jnp.int32, (1, tn), 1)
        mask = ((base + lane) < n_valid).astype(jnp.float32)
        hm = h2 * mask
        stat_ref[0, :, 0:1] = jnp.sum(hm, axis=-1, keepdims=True)       # sum
        stat_ref[0, :, 1:2] = jnp.sum(hm * h2, axis=-1, keepdims=True)  # sumsq
    return kernel


def _make_stage2_kernel(tn, n_valid):
    """BN1 folded into match[3] conv; match[3..4] Conv+ReLU; BN2 partial stats."""
    def kernel(h2_ref, w3_ref, b3_ref, h3_ref, stat_ref):
        h3 = jnp.dot(w3_ref[...], h2_ref[...],
                     preferred_element_type=jnp.float32) + b3_ref[...]
        h3 = jnp.maximum(h3, 0.0)                                 # (H, tn) f32
        h3_ref[...] = h3.astype(jnp.bfloat16)
        base = pl.program_id(0) * tn
        lane = lax.broadcasted_iota(jnp.int32, (1, tn), 1)
        mask = ((base + lane) < n_valid).astype(jnp.float32)
        hm = h3 * mask
        stat_ref[0, :, 0:1] = jnp.sum(hm, axis=-1, keepdims=True)
        stat_ref[0, :, 1:2] = jnp.sum(hm * h3, axis=-1, keepdims=True)
    return kernel


def _bn_fold(stats, n_valid, gamma, beta):
    """Per-channel affine a*h + c equivalent to training-mode BatchNorm1d."""
    tot = jnp.sum(stats, axis=0)                                  # (H, 2)
    mu = tot[:, 0] / n_valid
    var = jnp.maximum(tot[:, 1] / n_valid - mu * mu, 0.0)         # single-pass, biased
    inv = lax.rsqrt(var + BN_EPS)
    a = gamma * inv
    c = beta - a * mu
    return a, c


# =============================================================================
# Pallas-backed match head
# =============================================================================
def match_head(fused_x, params, *, force_tiled=False, tn_override=None):
    """fused_x: (B, K, cfg.m + lang_size) -> cluster_ref: (B, K)."""
    B, K, C = fused_x.shape
    assert C == C_IN
    n = B * K
    budget = _vmem_budget_bytes()

    # row-major bf16 slab (no host transpose pass; cast before padding)
    x = fused_x.reshape(n, C).astype(jnp.bfloat16)

    n_pad0 = _round_up(max(n, 1), 128)

    # ---------------- fused resident path (typical ScanRefer-scale N) ---------
    if (not force_tiled) and _fused_vmem_bytes(n_pad0) <= budget:
        n_pad = n_pad0
        xp = jnp.pad(x, ((0, n_pad - n), (0, 0)))                 # (n_pad, C_IN) bf16
        vmem = pl.BlockSpec(memory_space=pltpu.MemorySpace.VMEM)
        scores = pl.pallas_call(
            _make_fused_kernel(n_pad, n),
            out_shape=jax.ShapeDtypeStruct((1, n_pad), jnp.float32),
            in_specs=[vmem] * 13,
            out_specs=vmem,
            compiler_params=pltpu.CompilerParams(vmem_limit_bytes=int(budget)),
        )(xp,
          params["w1"], params["b1"],
          params["w2"], params["b2"],
          params["w3"].astype(jnp.bfloat16), params["b3"],
          params["g1"][:, None], params["be1"][:, None],
          params["g2"][:, None], params["be2"][:, None],
          params["w4"], params["b4"].reshape(1, 1))
        return scores[0, :n].reshape(B, K)

    # ---------------- tiled fallback path (huge N) -----------------------------
    tn = tn_override if tn_override is not None else min(n_pad0, 4096)
    tn = _round_up(int(tn), 128)
    n_pad = _round_up(max(n, 1), tn)
    grid_n = n_pad // tn
    xp = jnp.pad(x, ((0, n_pad - n), (0, 0)))                     # (n_pad, C_IN) bf16

    cparams = pltpu.CompilerParams(dimension_semantics=("parallel",),
                                   vmem_limit_bytes=int(min(budget, 48 << 20)))
    col = lambda c: pl.BlockSpec((c, tn), lambda g: (0, g))       # channel-major tiles
    rep = lambda shape: pl.BlockSpec(shape, (lambda g: (0,) * len(shape)))
    stat_spec = pl.BlockSpec((1, H, 2), lambda g: (g, 0, 0))
    stat_shape = jax.ShapeDtypeStruct((grid_n, H, 2), jnp.float32)

    # stage 1: fuse + match[0..1]; per-tile BN1 partial stats
    h2, st1 = pl.pallas_call(
        _make_stage1_kernel(tn, n),
        grid=(grid_n,),
        in_specs=[pl.BlockSpec((tn, C_IN), lambda g: (g, 0)),
                  rep((H, C_IN)), rep((H, 1)), rep((H, H)), rep((H, 1))],
        out_specs=[col(H), stat_spec],
        out_shape=[jax.ShapeDtypeStruct((H, n_pad), jnp.bfloat16), stat_shape],
        compiler_params=cparams,
    )(xp, params["w1"], params["b1"], params["w2"], params["b2"])

    # fold BN1 (match[2]) into the next conv (match[3])
    a1, c1 = _bn_fold(st1, jnp.float32(n), params["g1"], params["be1"])
    w3f = (params["w3"] * a1[None, :]).astype(jnp.bfloat16)
    b3f = (params["w3"] @ c1)[:, None] + params["b3"]

    # stage 2: match[3..4]; per-tile BN2 partial stats
    h3, st2 = pl.pallas_call(
        _make_stage2_kernel(tn, n),
        grid=(grid_n,),
        in_specs=[col(H), rep((H, H)), rep((H, 1))],
        out_specs=[col(H), stat_spec],
        out_shape=[jax.ShapeDtypeStruct((H, n_pad), jnp.bfloat16), stat_shape],
        compiler_params=cparams,
    )(h2, w3f, b3f)

    # fold BN2 (match[5]) into the final conv (match[6]); trivial (1,H)x(H,N)
    # conv done as one XLA dot on the single HBM read of h3 (no 3rd launch).
    a2, c2 = _bn_fold(st2, jnp.float32(n), params["g2"], params["be2"])
    w4v = params["w4"][0] * a2                                    # (H,)
    b4s = jnp.dot(params["w4"][0], c2) + params["b4"][0]
    scores = jnp.dot(w4v, h3.astype(jnp.float32)) + b4s           # (n_pad,)
    return scores[:n].reshape(B, K)


# ---- pure-JAX f32 reference (same layer semantics as the PyTorch module) ------
def match_head_reference(fused_x, params):
    B, K, _ = fused_x.shape
    x = fused_x.reshape(B * K, C_IN).astype(jnp.bfloat16).astype(jnp.float32)
    w1 = params["w1"].astype(jnp.float32)
    w2 = params["w2"].astype(jnp.float32)
    h = jnp.maximum(x @ w1.T + params["b1"][:, 0], 0.0)
    h = jnp.maximum(h @ w2.T + params["b2"][:, 0], 0.0)
    h = ((h - h.mean(0)) * lax.rsqrt(h.var(0) + BN_EPS)
         * params["g1"] + params["be1"])
    h = jnp.maximum(h @ params["w3"].T + params["b3"][:, 0], 0.0)
    h = ((h - h.mean(0)) * lax.rsqrt(h.var(0) + BN_EPS)
         * params["g2"] + params["be2"])
    s = h @ params["w4"][0] + params["b4"][0]
    return s.reshape(B, K)


# ---- deterministic parameter init (shapes from __init__) ----------------------
def init_params(key):
    ks = jax.random.split(key, 8)

    def unif(k, shape, fan_in):
        bound = 1.0 / np.sqrt(fan_in)
        return jax.random.uniform(k, shape, jnp.float32, -bound, bound)

    return {
        # Conv1d(k=1) weights in PyTorch (C_out, C_in) layout (channel-major matmul).
        "w1": unif(ks[0], (H, C_IN), C_IN).astype(jnp.bfloat16),
        "b1": unif(ks[1], (H, 1), C_IN),
        "w2": unif(ks[2], (H, H), H).astype(jnp.bfloat16),
        "b2": unif(ks[3], (H, 1), H),
        "g1": jnp.ones((H,), jnp.float32), "be1": jnp.zeros((H,), jnp.float32),
        "w3": unif(ks[4], (H, H), H),
        "b3": unif(ks[5], (H, 1), H),
        "g2": jnp.ones((H,), jnp.float32), "be2": jnp.zeros((H,), jnp.float32),
        "w4": unif(ks[6], (1, H), H),
        "b4": unif(ks[7], (1,), H),
    }


# ---- host-side glue: vectorized proposal->batch grouping + padding ------------
def group_and_fuse(features, proposals_idx, proposals_offset, offsets, lang_emb,
                   batch_size, m):
    feats = np.asarray(features, dtype=np.float32)
    pidx = np.asarray(proposals_idx)
    poff = np.asarray(proposals_offset)
    boff = np.asarray(offsets)
    n_prop = feats.shape[0]

    # batch id of each proposal = bucket of its first point id in the batch offsets.
    # TODO(synk): the reference carries the previous batch_id for out-of-range
    # point ids; searchsorted+clip assumes point ids lie within [boff[0], boff[-1]).
    first_pt = pidx[poff[:-1], 1]
    batch_ids = np.clip(np.searchsorted(boff, first_pt, side="right") - 1,
                        0, batch_size - 1).astype(np.int32)

    counts = np.bincount(batch_ids, minlength=batch_size)
    max_n = int(counts.max()) if n_prop else 0

    order = np.argsort(batch_ids, kind="stable")
    starts = np.concatenate([[0], np.cumsum(counts)[:-1]])
    sorted_bids = batch_ids[order]
    pos = np.arange(n_prop) - starts[sorted_bids]

    grouped = np.zeros((batch_size, max_n, m), dtype=np.float32)
    grouped[sorted_bids, pos] = feats[order]

    lang = np.asarray(lang_emb, dtype=np.float32)[:, None, :].repeat(max_n, axis=1)
    fused = np.concatenate([grouped, lang], axis=-1)              # (B, max_n, m+L)
    return jnp.asarray(fused, jnp.float32), batch_ids, max_n


# ---- demo ----------------------------------------------------------------------
if __name__ == "__main__":
    key = jax.random.PRNGKey(0)
    k_feat, k_lang, k_pts, k_par = jax.random.split(key, 4)

    n_proposals = 700            # total proposals across the batch
    pts_per_prop = 3
    n_points = 2048
    offsets = np.array([0, 1000, 2048], dtype=np.int32)       # batch point offsets

    features = jax.random.normal(k_feat, (n_proposals, CFG_M), jnp.float32)
    lang_emb = jax.random.normal(k_lang, (BATCH_SIZE, LANG_SIZE), jnp.float32)
    point_ids = jax.random.randint(k_pts, (n_proposals * pts_per_prop,), 0, n_points)
    proposals_idx = np.stack(
        [np.repeat(np.arange(n_proposals), pts_per_prop),
         np.asarray(point_ids)], axis=1).astype(np.int32)
    proposals_offset = (np.arange(n_proposals + 1) * pts_per_prop).astype(np.int32)

    params = init_params(k_par)

    fused_x, proposal_batch_ids, max_n = group_and_fuse(
        features, proposals_idx, proposals_offset, offsets, lang_emb,
        BATCH_SIZE, CFG_M)

    ref = match_head_reference(fused_x, params)
    tol = 0.1 * (1.0 + float(jnp.max(jnp.abs(ref))))

    # fused, VMEM-resident single-kernel path (default for this problem size)
    cluster_ref = match_head(fused_x, params)                 # (B, max_n)
    jax.block_until_ready(cluster_ref)
    assert cluster_ref.shape == (BATCH_SIZE, max_n)
    assert bool(jnp.all(jnp.isfinite(cluster_ref)))
    err = float(jnp.max(jnp.abs(cluster_ref - ref)))
    assert err < tol, f"fused kernel/reference mismatch: {err} >= {tol}"

    # tiled fallback path (exercised with a small tile so grid > 1)
    cluster_tiled = match_head(fused_x, params, force_tiled=True, tn_override=256)
    jax.block_until_ready(cluster_tiled)
    assert cluster_tiled.shape == (BATCH_SIZE, max_n)
    assert bool(jnp.all(jnp.isfinite(cluster_tiled)))
    err_t = float(jnp.max(jnp.abs(cluster_tiled - ref)))
    assert err_t < tol, f"tiled kernel/reference mismatch: {err_t} >= {tol}"

    print("KERNEL_OK")
</pallas_src>

<mosaic_0001>
module attributes {stable_mosaic.version = 11 : i64} {
  func.func @kernel(%arg0: memref<768x64xbf16, #tpu.memory_space<vmem>>, %arg1: memref<32x64xbf16, #tpu.memory_space<vmem>>, %arg2: memref<32x1xf32, #tpu.memory_space<vmem>>, %arg3: memref<32x32xbf16, #tpu.memory_space<vmem>>, %arg4: memref<32x1xf32, #tpu.memory_space<vmem>>, %arg5: memref<32x32xbf16, #tpu.memory_space<vmem>>, %arg6: memref<32x1xf32, #tpu.memory_space<vmem>>, %arg7: memref<32x1xf32, #tpu.memory_space<vmem>>, %arg8: memref<32x1xf32, #tpu.memory_space<vmem>>, %arg9: memref<32x1xf32, #tpu.memory_space<vmem>>, %arg10: memref<32x1xf32, #tpu.memory_space<vmem>>, %arg11: memref<1x32xf32, #tpu.memory_space<vmem>>, %arg12: memref<1x1xf32, #tpu.memory_space<vmem>>, %arg13: memref<1x768xf32, #tpu.memory_space<vmem>>) attributes {dimension_semantics = [], scalar_prefetch = 0 : i64, scratch_operands = 0 : i64, tpu.core_type = #tpu.core_type<tc>} {
    %c0 = arith.constant 0 : index
    %c0_0 = arith.constant 0 : index
    %0 = vector.load %arg0[%c0, %c0_0] : memref<768x64xbf16, #tpu.memory_space<vmem>>, vector<768x64xbf16>
    %c0_1 = arith.constant 0 : index
    %c0_2 = arith.constant 0 : index
    %1 = vector.load %arg1[%c0_1, %c0_2] : memref<32x64xbf16, #tpu.memory_space<vmem>>, vector<32x64xbf16>
    %cst = arith.constant dense<0.000000e+00> : vector<32x768xf32>
    %2 = tpu.matmul %1, %0, %cst {dimension_numbers = #tpu.dot_dimension_numbers<[1], [1], [0], [0], [0, 0, 1, 0], [], []>} : vector<32x64xbf16>, vector<768x64xbf16>, vector<32x768xf32> -> vector<32x768xf32>
    %c0_3 = arith.constant 0 : index
    %c0_4 = arith.constant 0 : index
    %3 = vector.load %arg2[%c0_3, %c0_4] : memref<32x1xf32, #tpu.memory_space<vmem>>, vector<32x1xf32>
    %4 = vector.broadcast %3 : vector<32x1xf32> to vector<32x768xf32>
    %5 = arith.addf %2, %4 : vector<32x768xf32>
    %cst_5 = arith.constant 0.000000e+00 : f32
    %6 = vector.broadcast %cst_5 : f32 to vector<32x768xf32>
    %7 = arith.maximumf %5, %6 : vector<32x768xf32>
    %c0_6 = arith.constant 0 : index
    %c0_7 = arith.constant 0 : index
    %8 = vector.load %arg3[%c0_6, %c0_7] : memref<32x32xbf16, #tpu.memory_space<vmem>>, vector<32x32xbf16>
    %9 = arith.truncf %7 : vector<32x768xf32> to vector<32x768xbf16>
    %cst_8 = arith.constant dense<0.000000e+00> : vector<32x768xf32>
    %10 = tpu.matmul %8, %9, %cst_8 {dimension_numbers = #tpu.dot_dimension_numbers<[1], [0], [0], [1], [0, 0, 1, 1], [], []>} : vector<32x32xbf16>, vector<32x768xbf16>, vector<32x768xf32> -> vector<32x768xf32>
    %c0_9 = arith.constant 0 : index
    %c0_10 = arith.constant 0 : index
    %11 = vector.load %arg4[%c0_9, %c0_10] : memref<32x1xf32, #tpu.memory_space<vmem>>, vector<32x1xf32>
    %12 = vector.broadcast %11 : vector<32x1xf32> to vector<32x768xf32>
    %13 = arith.addf %10, %12 : vector<32x768xf32>
    %cst_11 = arith.constant 0.000000e+00 : f32
    %14 = vector.broadcast %cst_11 : f32 to vector<32x768xf32>
    %15 = arith.maximumf %13, %14 : vector<32x768xf32>
    %16 = tpu.iota {dimensions = array<i32: 1>} : vector<1x768xi32>
    %c738_i32 = arith.constant 738 : i32
    %17 = vector.broadcast %c738_i32 : i32 to vector<1x768xi32>
    %18 = arith.cmpi slt, %16, %17 : vector<1x768xi32>
    %19 = arith.extui %18 : vector<1x768xi1> to vector<1x768xi32>
    %20 = arith.sitofp %19 : vector<1x768xi32> to vector<1x768xf32>
    %21 = vector.broadcast %20 : vector<1x768xf32> to vector<32x768xf32>
    %22 = arith.mulf %15, %21 : vector<32x768xf32>
    %cst_12 = arith.constant dense<0.000000e+00> : vector<32xf32>
    %23 = vector.multi_reduction <add>, %22, %cst_12 [1] : vector<32x768xf32> to vector<32xf32>
    %24 = vector.shape_cast %23 : vector<32xf32> to vector<32x1xf32>
    %cst_13 = arith.constant 0.00135501358 : f32
    %25 = vector.broadcast %cst_13 : f32 to vector<32x1xf32>
    %26 = arith.mulf %24, %25 : vector<32x1xf32>
    %27 = arith.mulf %22, %15 : vector<32x768xf32>
    %cst_14 = arith.constant dense<0.000000e+00> : vector<32xf32>
    %28 = vector.multi_reduction <add>, %27, %cst_14 [1] : vector<32x768xf32> to vector<32xf32>
    %29 = vector.shape_cast %28 : vector<32xf32> to vector<32x1xf32>
    %cst_15 = arith.constant 0.00135501358 : f32
    %30 = vector.broadcast %cst_15 : f32 to vector<32x1xf32>
    %31 = arith.mulf %29, %30 : vector<32x1xf32>
    %32 = arith.mulf %26, %26 : vector<32x1xf32>
    %33 = arith.subf %31, %32 : vector<32x1xf32>
    %cst_16 = arith.constant 0.000000e+00 : f32
    %34 = vector.broadcast %cst_16 : f32 to vector<32x1xf32>
    %35 = arith.maximumf %33, %34 : vector<32x1xf32>
    %c0_17 = arith.constant 0 : index
    %c0_18 = arith.constant 0 : index
    %36 = vector.load %arg7[%c0_17, %c0_18] : memref<32x1xf32, #tpu.memory_space<vmem>>, vector<32x1xf32>
    %cst_19 = arith.constant 9.99999974E-6 : f32
    %37 = vector.broadcast %cst_19 : f32 to vector<32x1xf32>
    %38 = arith.addf %35, %37 : vector<32x1xf32>
    %39 = math.rsqrt %38 : vector<32x1xf32>
    %40 = arith.mulf %36, %39 : vector<32x1xf32>
    %c0_20 = arith.constant 0 : index
    %c0_21 = arith.constant 0 : index
    %41 = vector.load %arg8[%c0_20, %c0_21] : memref<32x1xf32, #tpu.memory_space<vmem>>, vector<32x1xf32>
    %42 = arith.mulf %40, %26 : vector<32x1xf32>
    %43 = arith.subf %41, %42 : vector<32x1xf32>
    %44 = vector.broadcast %40 : vector<32x1xf32> to vector<32x768xf32>
    %45 = arith.mulf %44, %15 : vector<32x768xf32>
    %46 = vector.broadcast %43 : vector<32x1xf32> to vector<32x768xf32>
    %47 = arith.addf %45, %46 : vector<32x768xf32>
    %48 = arith.truncf %47 : vector<32x768xf32> to vector<32x768xbf16>
    %c0_22 = arith.constant 0 : index
    %c0_23 = arith.constant 0 : index
    %49 = vector.load %arg5[%c0_22, %c0_23] : memref<32x32xbf16, #tpu.memory_space<vmem>>, vector<32x32xbf16>
    %cst_24 = arith.constant dense<0.000000e+00> : vector<32x768xf32>
    %50 = tpu.matmul %49, %48, %cst_24 {dimension_numbers = #tpu.dot_dimension_numbers<[1], [0], [0], [1], [0, 0, 1, 1], [], []>} : vector<32x32xbf16>, vector<32x768xbf16>, vector<32x768xf32> -> vector<32x768xf32>
    %c0_25 = arith.constant 0 : index
    %c0_26 = arith.constant 0 : index
    %51 = vector.load %arg6[%c0_25, %c0_26] : memref<32x1xf32, #tpu.memory_space<vmem>>, vector<32x1xf32>
    %52 = vector.broadcast %51 : vector<32x1xf32> to vector<32x768xf32>
    %53 = arith.addf %50, %52 : vector<32x768xf32>
    %cst_27 = arith.constant 0.000000e+00 : f32
    %54 = vector.broadcast %cst_27 : f32 to vector<32x768xf32>
    %55 = arith.maximumf %53, %54 : vector<32x768xf32>
    %56 = vector.broadcast %20 : vector<1x768xf32> to vector<32x768xf32>
    %57 = arith.mulf %55, %56 : vector<32x768xf32>
    %cst_28 = arith.constant dense<0.000000e+00> : vector<32xf32>
    %58 = vector.multi_reduction <add>, %57, %cst_28 [1] : vector<32x768xf32> to vector<32xf32>
    %59 = vector.shape_cast %58 : vector<32xf32> to vector<32x1xf32>
    %cst_29 = arith.constant 0.00135501358 : f32
    %60 = vector.broadcast %cst_29 : f32 to vector<32x1xf32>
    %61 = arith.mulf %59, %60 : vector<32x1xf32>
    %62 = arith.mulf %57, %55 : vector<32x768xf32>
    %cst_30 = arith.constant dense<0.000000e+00> : vector<32xf32>
    %63 = vector.multi_reduction <add>, %62, %cst_30 [1] : vector<32x768xf32> to vector<32xf32>
    %64 = vector.shape_cast %63 : vector<32xf32> to vector<32x1xf32>
    %cst_31 = arith.constant 0.00135501358 : f32
    %65 = vector.broadcast %cst_31 : f32 to vector<32x1xf32>
    %66 = arith.mulf %64, %65 : vector<32x1xf32>
    %67 = arith.mulf %61, %61 : vector<32x1xf32>
    %68 = arith.subf %66, %67 : vector<32x1xf32>
    %cst_32 = arith.constant 0.000000e+00 : f32
    %69 = vector.broadcast %cst_32 : f32 to vector<32x1xf32>
    %70 = arith.maximumf %68, %69 : vector<32x1xf32>
    %c0_33 = arith.constant 0 : index
    %c0_34 = arith.constant 0 : index
    %71 = vector.load %arg9[%c0_33, %c0_34] : memref<32x1xf32, #tpu.memory_space<vmem>>, vector<32x1xf32>
    %cst_35 = arith.constant 9.99999974E-6 : f32
    %72 = vector.broadcast %cst_35 : f32 to vector<32x1xf32>
    %73 = arith.addf %70, %72 : vector<32x1xf32>
    %74 = math.rsqrt %73 : vector<32x1xf32>
    %75 = arith.mulf %71, %74 : vector<32x1xf32>
    %c0_36 = arith.constant 0 : index
    %c0_37 = arith.constant 0 : index
    %76 = vector.load %arg10[%c0_36, %c0_37] : memref<32x1xf32, #tpu.memory_space<vmem>>, vector<32x1xf32>
    %77 = arith.mulf %75, %61 : vector<32x1xf32>
    %78 = arith.subf %76, %77 : vector<32x1xf32>
    %79 = vector.broadcast %75 : vector<32x1xf32> to vector<32x768xf32>
    %80 = arith.mulf %79, %55 : vector<32x768xf32>
    %81 = vector.broadcast %78 : vector<32x1xf32> to vector<32x768xf32>
    %82 = arith.addf %80, %81 : vector<32x768xf32>
    %c0_38 = arith.constant 0 : index
    %c0_39 = arith.constant 0 : index
    %83 = vector.load %arg11[%c0_38, %c0_39] : memref<1x32xf32, #tpu.memory_space<vmem>>, vector<1x32xf32>
    %cst_40 = arith.constant dense<0.000000e+00> : vector<1x768xf32>
    %84 = tpu.matmul %83, %82, %cst_40 {dimension_numbers = #tpu.dot_dimension_numbers<[1], [0], [0], [1], [0, 0, 1, 1], [], []>} : vector<1x32xf32>, vector<32x768xf32>, vector<1x768xf32> -> vector<1x768xf32>
    %c0_41 = arith.constant 0 : index
    %c0_42 = arith.constant 0 : index
    %85 = vector.load %arg12[%c0_41, %c0_42] : memref<1x1xf32, #tpu.memory_space<vmem>>, vector<1x1xf32>
    %86 = vector.broadcast %85 : vector<1x1xf32> to vector<1x768xf32>
    %87 = arith.addf %84, %86 : vector<1x768xf32>
    %c0_43 = arith.constant 0 : index
    %c0_44 = arith.constant 0 : index
    %88 = vector.load %arg13[%c0_43, %c0_44] : memref<1x768xf32, #tpu.memory_space<vmem>>, vector<1x768xf32>
    tpu.vector_store %arg13[%c0_43, %c0_44], %87 {strides = array<i32>} : memref<1x768xf32, #tpu.memory_space<vmem>>, vector<1x768xf32>,
    return
  }
}

</mosaic_0001>

<bundles_post_ra>
// kernel: tpu_custom_call.1
= control target key start
LH: loop header
LB: loop body
LE: loop exit
PB: predicated region body
PF: predicated region fallthrough
CT: control target
= control target key end

     0   :  { %s3174_s0 = inlined_call_operand.vmem [shape: bf16[768,64], index: 0, kind: input, shape index: {}]   ;;  %s3175_s1 = inlined_call_operand.vmem [shape: bf16[32,64], index: 1, kind: input, shape index: {}]   ;;  %s3176_s2 = inlined_call_operand.vmem [shape: f32[32,1], index: 2, kind: input, shape index: {}]   ;;  %s3177_s3 = inlined_call_operand.vmem [shape: bf16[32,32], index: 3, kind: input, shape index: {}]   ;;  %s3178_s4 = inlined_call_operand.vmem [shape: f32[32,1], index: 4, kind: input, shape index: {}]   ;;  %s3179_s5 = inlined_call_operand.vmem [shape: bf16[32,32], index: 5, kind: input, shape index: {}]   ;;  %s3180_s6 = inlined_call_operand.vmem [shape: f32[32,1], index: 6, kind: input, shape index: {}]   ;;  %s3181_s7 = inlined_call_operand.vmem [shape: f32[32,1], index: 7, kind: input, shape index: {}]   ;;  %s3182_s8 = inlined_call_operand.vmem [shape: f32[32,1], index: 8, kind: input, shape index: {}]   ;;  %s3183_s9 = inlined_call_operand.vmem [shape: f32[32,1], index: 9, kind: input, shape index: {}]   ;;  %s3184_s10 = inlined_call_operand.vmem [shape: f32[32,1], index: 10, kind: input, shape index: {}]   ;;  %s3185_s11 = inlined_call_operand.vmem [shape: f32[1,32], index: 11, kind: input, shape index: {}]   ;;  %s3186_s12 = inlined_call_operand.<no memory space> [shape: f32[1,1], index: 12, kind: input, shape index: {}]   ;;  %s3187_s13 = inlined_call_operand.hbm [shape: f32[1,768], index: 13, kind: output, shape index: {}]  }
   0x1   :  { %v18_v0 = vstv %s3186_s12 }
   0x2   :  { %19 = vst [vmem:[#allocation2] sm:$0x1] %v18_v0 }
   0x3   :  { %v2199_v1 = vld [vmem:[%s3174_s0 + $0x78] sm:$0xff]   ;;  %vm422_vm0 = vcmask 523264   ;;  %v2201_v3 = vld [vmem:[%s3174_s0 + $0x70] sm:$0xff]   ;;  %v2291_v7 = vmov 0   ;;  %v2203_v10 = vld [vmem:[%s3174_s0 + $0x68] sm:$0xff]  }
   0x4   :  { %v2200_v2 = vld [vmem:[%s3174_s0 + $0x38] sm:$0xff]   ;;  %2169 = vmatprep.subr.msk.bf16.mxu0 %vm422_vm0, %v2199_v1  ;;  %v2202_v5 = vld [vmem:[%s3174_s0 + $0x30] sm:$0xff]   ;;  %2198 = vset.pattern.permute.xlu1 %v2291_v7  ;;  %v2205_v14 = vld [vmem:[%s3174_s0 + $0x28] sm:$0xff]  }
   0x5   :  { %v451_v4 = vsel %vm422_vm0, %v2200_v2, 0  ;;  %v2204_v6 = vld [vmem:[%s3174_s0 + $0xf8] sm:$0xff]   ;;  %2197 = vset.pattern.permute.xlu0 %v2291_v7  ;;  %v448_v9 = vsel %vm422_vm0, %v2202_v5, 0  ;;  %v2208_v12 = vld [vmem:[%s3174_s0 + $0xf0] sm:$0xff]   ;;  %v2212_v16 = vld [vmem:[%s3174_s0 + $0xe8] sm:$0xff]   ;;  %v445_v17 = vsel %vm422_vm0, %v2205_v14, 0 }
   0x6   :  { %2110 = vmatpush3.bf16.xpose.msra.mxu0 %v451_v4  ;;  %2177 = vmatprep.subr.msk.bf16.mxu1 %vm422_vm0, %v2204_v6  ;;  %v2206_v8 = vld [vmem:[%s3174_s0 + $0xb8] sm:$0xff]   ;;  %v2210_v13 = vld [vmem:[%s3174_s0 + $0xb0] sm:$0xff]   ;;  %v2207_v18 = vld [vmem:[%s3174_s0 + $0x60] sm:$0xff]  }
   0x7   :  { %2170 = vmatprep.subr.msk.bf16.mxu0 %vm422_vm0, %v2201_v3  ;;  %v499_v11 = vsel %vm422_vm0, %v2206_v8, 0  ;;  %v496_v15 = vsel %vm422_vm0, %v2210_v13, 0  ;;  %v2214_v19 = vld [vmem:[%s3174_s0 + $0xa8] sm:$0xff]   ;;  %v2209_v20 = vld [vmem:[%s3174_s0 + $0x20] sm:$0xff]   ;;  %v2211_v24 = vld [vmem:[%s3174_s0 + $0x58] sm:$0xff]  }
   0x8   :  { %2130 = vmatpush3.bf16.xpose.msra.mxu1 %v499_v11  ;;  %v493_v21 = vsel %vm422_vm0, %v2214_v19, 0  ;;  %v2216_v22 = vld [vmem:[%s3174_s0 + $0xe0] sm:$0xff]   ;;  %v442_v23 = vsel %vm422_vm0, %v2209_v20, 0  ;;  %v2213_v27 = vld [vmem:[%s3174_s0 + $0x18] sm:$0xff]   ;;  %v2215_v31 = vld [vmem:[%s3174_s0 + $0x50] sm:$0xff]  }
   0x9   :  { %2178 = vmatprep.subr.msk.bf16.mxu1 %vm422_vm0, %v2208_v12  ;;  %v2218_v25 = vld [vmem:[%s3174_s0 + $0xa0] sm:$0xff]   ;;  %v2220_v29 = vld [vmem:[%s3174_s0 + $0xd8] sm:$0xff]   ;;  %v439_v30 = vsel %vm422_vm0, %v2213_v27, 0  ;;  %v2217_v33 = vld [vmem:[%s3174_s0 + $0x10] sm:$0xff]  }
   0xa   :  { %v2439_v26 = vld [vmem:[%s3175_s1] sm:$0xff]   ;;  %v490_v28 = vsel %vm422_vm0, %v2218_v25, 0  ;;  %v2222_v32 = vld [vmem:[%s3174_s0 + $0x98] sm:$0xff]   ;;  %v2224_v35 = vld [vmem:[%s3174_s0 + $0xd0] sm:$0xff]   ;;  %v436_v36 = vsel %vm422_vm0, %v2217_v33, 0 }
   0xb   :  { %2125 = vmatprep.mubr.msk.bf16.mxu0 %vm422_vm0, %v2439_v26  ;;  %2145 = vmatprep.mubr.msk.bf16.mxu1 %vm422_vm0, %v2439_v26  ;;  %v487_v34 = vsel %vm422_vm0, %v2222_v32, 0  ;;  %v2219_v37 = vld [vmem:[%s3174_s0 + $0x48] sm:$0xff]   ;;  %v2226_v38 = vld [vmem:[%s3174_s0 + $0x90] sm:$0xff]   ;;  %v2223_v43 = vld [vmem:[%s3174_s0 + $0x40] sm:$0xff]  }
   0xc   :  { %v2221_v39 = vld [vmem:[%s3174_s0 + $0x8] sm:$0xff]   ;;  %v484_v40 = vsel %vm422_vm0, %v2226_v38, 0  ;;  %v148_v44 = vld [vmem:[%s3176_s2] sm:$0xff]  ;;  %v150_v45 = vld [vmem:[%s3176_s2 + $0x10] sm:$0xff] }
   0xd   :  { %v2228_v41 = vld [vmem:[%s3174_s0 + $0xc8] sm:$0xff]   ;;  %v433_v42 = vsel %vm422_vm0, %v2221_v39, 0  ;;  %v2225_v46 = vld [vmem:[%s3174_s0] sm:$0xff]   ;;  %154 = vperm.xlu1 %2198, %v148_v44   ;;  %164 = vperm.xlu0 %2197, %v150_v45   ;;  %v151_v49 = vld [vmem:[%s3176_s2 + $0x18] sm:$0xff] }
   0xe   :  { %2112 = vmatpush3.bf16.xpose.msra.mxu0 %v448_v9  ;;  %v2230_v47 = vld [vmem:[%s3174_s0 + $0x88] sm:$0xff]   ;;  %v2233_v51 = vld [vmem:[%s3174_s0 + $0xc0] sm:$0xff]  }
   0xf   :  { %2171 = vmatprep.subr.msk.bf16.mxu0 %vm422_vm0, %v2203_v10  ;;  %v149_v48 = vld [vmem:[%s3176_s2 + $0x8] sm:$0xff]  ;;  %v481_v50 = vsel %vm422_vm0, %v2230_v47, 0 }
  0x10   :  { %2132 = vmatpush3.bf16.xpose.msra.mxu1 %v496_v15 }
  0x11   :  { %2179 = vmatprep.subr.msk.bf16.mxu1 %vm422_vm0, %v2212_v16  ;;  %159 = vperm.xlu1 %2198, %v149_v48  }
  0x16   :  { %2114 = vmatpush3.bf16.xpose.msra.mxu0 %v445_v17 }
  0x17   :  { %2172 = vmatprep.subr.msk.bf16.mxu0 %vm422_vm0, %v2207_v18 }
  0x18   :  { %2134 = vmatpush3.bf16.xpose.msra.mxu1 %v493_v21 }
  0x19   :  { %2180 = vmatprep.subr.msk.bf16.mxu1 %vm422_vm0, %v2216_v22 }
  0x1e   :  { %2116 = vmatpush3.bf16.xpose.msra.mxu0 %v442_v23 }
  0x1f   :  { %2173 = vmatprep.subr.msk.bf16.mxu0 %vm422_vm0, %v2211_v24 }
  0x20   :  { %2136 = vmatpush3.bf16.xpose.msra.mxu1 %v490_v28 }
  0x21   :  { %2181 = vmatprep.subr.msk.bf16.mxu1 %vm422_vm0, %v2220_v29 }
  0x26   :  { %2118 = vmatpush3.bf16.xpose.msra.mxu0 %v439_v30 }
  0x27   :  { %2174 = vmatprep.subr.msk.bf16.mxu0 %vm422_vm0, %v2215_v31 }
  0x28   :  { %2138 = vmatpush3.bf16.xpose.msra.mxu1 %v487_v34 }
  0x29   :  { %2182 = vmatprep.subr.msk.bf16.mxu1 %vm422_vm0, %v2224_v35 }
  0x2e   :  { %2120 = vmatpush3.bf16.xpose.msra.mxu0 %v436_v36 }
  0x2f   :  { %2175 = vmatprep.subr.msk.bf16.mxu0 %vm422_vm0, %v2219_v37 }
  0x30   :  { %2140 = vmatpush3.bf16.xpose.msra.mxu1 %v484_v40 }
  0x31   :  { %2183 = vmatprep.subr.msk.bf16.mxu1 %vm422_vm0, %v2228_v41 }
  0x36   :  { %2122 = vmatpush3.bf16.xpose.msra.mxu0 %v433_v42 }
  0x37   :  { %2176 = vmatprep.subr.msk.bf16.mxu0 %vm422_vm0, %v2223_v43 }
  0x38   :  { %20 = vsyncpa [#allocation4], 0  ;;  %169 = vperm.xlu0 %2197, %v151_v49   ;;  %v775_v52 = vld [vmem:[%s3178_s4 + $0x18] sm:$0xff]  ;;  %v430_v53 = vsel %vm422_vm0, %v2225_v46, 0  ;;  %v774_v55 = vld [vmem:[%s3178_s4 + $0x10] sm:$0xff]  ;;  %2142 = vmatpush3.bf16.xpose.msra.mxu1 %v481_v50  ;;  %vm806_vm1 = vcmask 261120  }
  0x39   :  { %v2229_v54 = vld [vmem:[%s3174_s0 + $0x178] sm:$0xff]   ;;  %2184 = vmatprep.subr.msk.bf16.mxu1 %vm422_vm0, %v2233_v51  ;;  %v2235_v56 = vld [vmem:[%s3174_s0 + $0x80] sm:$0xff]   ;;  %793 = vperm.xlu1 %2198, %v775_v52   ;;  %v773_v57 = vld [vmem:[%s3178_s4 + $0x8] sm:$0xff] }
  0x3a   :  { %v2231_v58 = vld [vmem:[%s3174_s0 + $0x138] sm:$0xff]   ;;  %v772_v59 = vld [vmem:[%s3178_s4] sm:$0xff]  ;;  %v478_v60 = vsel %vm422_vm0, %v2235_v56, 0  ;;  %v2232_v61 = vld [vmem:[%s3175_s1 + $0x8] sm:$0xff]  }
  0x3b   :  { %v547_v62 = vsel %vm422_vm0, %v2231_v58, 0  ;;  %v2234_v63 = vld [vmem:[%s3174_s0 + $0x170] sm:$0xff]   ;;  %v2237_v2 = vld [vmem:[%s3174_s0 + $0x168] sm:$0xff]   ;;  %v2239_v5 = vld [vmem:[%s3174_s0 + $0x160] sm:$0xff]  }
  0x3c   :  { %788 = vperm.xlu0 %2197, %v774_v55   ;;  %v2236_v0 = vld [vmem:[%s3174_s0 + $0x130] sm:$0xff]   ;;  %v2238_v3 = vld [vmem:[%s3174_s0 + $0x128] sm:$0xff]   ;;  %v2240_v6 = vld [vmem:[%s3174_s0 + $0x120] sm:$0xff]  }
  0x3d   :  { %783 = vperm.xlu1 %2198, %v773_v57   ;;  %v544_v1 = vsel %vm422_vm0, %v2236_v0, 0  ;;  %v541_v4 = vsel %vm422_vm0, %v2238_v3, 0  ;;  %v538_v8 = vsel %vm422_vm0, %v2240_v6, 0  ;;  %v2241_v9 = vld [vmem:[%s3174_s0 + $0x158] sm:$0xff]   ;;  %v2243_v12 = vld [vmem:[%s3174_s0 + $0x150] sm:$0xff]   ;;  %v2245_v15 = vld [vmem:[%s3174_s0 + $0x148] sm:$0xff]  }
  0x3e   :  { %2124 = vmatpush3.bf16.xpose.msra.mxu0 %v430_v53  ;;  %v2242_v10 = vld [vmem:[%s3174_s0 + $0x118] sm:$0xff]   ;;  %v2244_v13 = vld [vmem:[%s3174_s0 + $0x110] sm:$0xff]   ;;  %v2246_v16 = vld [vmem:[%s3174_s0 + $0x108] sm:$0xff]  }
  0x3f   :  { %2185 = vmatprep.subr.msk.bf16.mxu0 %vm422_vm0, %v2229_v54  ;;  %v535_v11 = vsel %vm422_vm0, %v2242_v10, 0  ;;  %v532_v14 = vsel %vm422_vm0, %v2244_v13, 0  ;;  %v529_v17 = vsel %vm422_vm0, %v2246_v16, 0  ;;  %v2247_v18 = vld [vmem:[%s3174_s0 + $0x140] sm:$0xff]  }
  0x40   :  { %778 = vperm.xlu0 %2197, %v772_v59   ;;  %2144 = vmatpush3.bf16.xpose.msra.mxu1 %v478_v60  ;;  %v2248_v19 = vld [vmem:[%s3174_s0 + $0x100] sm:$0xff]  }
  0x41   :  { %v526_v20 = vsel %vm422_vm0, %v2248_v19, 0  ;;  %v2250_v19 = vld [vmem:[%s3177_s3 + $0x8] sm:$0xff]  }
  0x45   :  { %2126 = vmatmul.mubr.msk.bf16.vlgmr.msra.gmra.mxu0 %vm422_vm0, %v2439_v26 }
  0x46   :  { %2150 = vmatpush3.bf16.xpose.msra.mxu0 %v547_v62  ;;  %2127 = vmatprep.mubr.msk.bf16.mxu0 %vm422_vm0, %v2232_v61 }
  0x47   :  { %2186 = vmatprep.subr.msk.bf16.mxu0 %vm422_vm0, %v2234_v63  ;;  %2146 = vmatmul.mubr.msk.bf16.vlgmr.msra.gmra.mxu1 %vm422_vm0, %v2439_v26 }
  0x48   :  { %2147 = vmatprep.mubr.msk.bf16.mxu1 %vm422_vm0, %v2232_v61 }
  0x4d   :  { %2128 = vmatmul.mubr.msk.bf16.gmra.mxu0 %vm422_vm0, %v2232_v61 }
  0x4e   :  { %2152 = vmatpush3.bf16.xpose.msra.mxu0 %v544_v1  ;;  %2165 = vmatprep.mubr.msk.bf16.mxu0 %vm422_vm0, %v2439_v26 }
  0x4f   :  { %2187 = vmatprep.subr.msk.bf16.mxu0 %vm422_vm0, %v2237_v2  ;;  %2148 = vmatmul.mubr.msk.bf16.gmra.mxu1 %vm422_vm0, %v2232_v61 }
  0x50   :  { %845 = vmatprep.mubr.bf16.mxu1 %v2291_v7 }
  0x56   :  { %2154 = vmatpush3.bf16.xpose.msra.mxu0 %v541_v4 }
  0x57   :  { %2188 = vmatprep.subr.msk.bf16.mxu0 %vm422_vm0, %v2239_v5 }
  0x5e   :  { %2156 = vmatpush3.bf16.xpose.msra.mxu0 %v538_v8 }
  0x5f   :  { %2189 = vmatprep.subr.msk.bf16.mxu0 %vm422_vm0, %v2241_v9 }
  0x66   :  { %2158 = vmatpush3.bf16.xpose.msra.mxu0 %v535_v11 }
  0x67   :  { %2190 = vmatprep.subr.msk.bf16.mxu0 %vm422_vm0, %v2243_v12  ;;  %v2249_v12 = vld [vmem:[%s3177_s3] sm:$0xff]  }
  0x6e   :  { %2160 = vmatpush3.bf16.xpose.msra.mxu0 %v532_v14 }
  0x6f   :  { %2191 = vmatprep.subr.msk.bf16.mxu0 %vm422_vm0, %v2245_v15 }
  0x76   :  { %2162 = vmatpush3.bf16.xpose.msra.mxu0 %v529_v17 }
  0x77   :  { %2192 = vmatprep.subr.msk.bf16.mxu0 %vm422_vm0, %v2247_v18 }
  0x7e   :  { %2164 = vmatpush3.bf16.xpose.msra.mxu0 %v526_v20 }
  0x85   :  { %2166 = vmatmul.mubr.msk.bf16.vlgmr.msra.gmra.mxu0 %vm422_vm0, %v2439_v26 }
  0x86   :  { %2167 = vmatprep.mubr.msk.bf16.mxu0 %vm422_vm0, %v2232_v61 }
  0x88   :  { %v2614_v23 = vpop.permute.xlu0 %164  ;;  %v2616_v25 = vpop.permute.xlu1 %154 }
  0x8c   :  { %v2621_v34 = vpop.permute.xlu1 %159 }
  0x8d   :  { %2168 = vmatmul.mubr.msk.bf16.gmra.mxu0 %vm422_vm0, %v2232_v61 }
  0x8e   :  { %1402 = vmatprep.mubr.bf16.mxu0 %v2291_v7 }
  0xb3   :  { %v2618_v31 = vpop.permute.xlu0 %169 }
 0x105   :  { %v607_v21 = vpop.f32.mrf.mxu0 }
 0x106   :  { %v608_v49 = vadd.f32 %v607_v21, %v2616_v25 }
 0x107   :  { %v609_v22 = vpop.f32.mrf.mxu0  ;;  %v660_v28 = vpop.f32.mrf.mxu1 }
 0x108   :  { %v610_v40 = vadd.f32 %v609_v22, %v2616_v25  ;;  %v732_v63 = vmax.f32 %v608_v49, 0.0  ;;  %v661_v3 = vadd.f32 %v660_v28, %v2616_v25 }
 0x109   :  { %v611_v24 = vpop.f32.mrf.mxu0  ;;  %v662_v30 = vpop.f32.mrf.mxu1 }
 0x10a   :  { %v612_v47 = vadd.f32 %v611_v24, %v2621_v34  ;;  %v733_v53 = vmax.f32 %v610_v40, 0.0  ;;  %v663_v58 = vadd.f32 %v662_v30, %v2616_v25  ;;  %v734_v14 = vmax.f32 %v661_v3, 0.0 }
 0x10b   :  { %v613_v27 = vpop.f32.mrf.mxu0  ;;  %v664_v32 = vpop.f32.mrf.mxu1 }
 0x10c   :  { %v614_v38 = vadd.f32 %v613_v27, %v2621_v34  ;;  %v738_v61 = vmax.f32 %v612_v47, 0.0  ;;  %v665_v4 = vadd.f32 %v664_v32, %v2621_v34  ;;  %v735_v8 = vmax.f32 %v663_v58, 0.0 }
 0x10d   :  { %v617_v29 = vpop.f32.mrf.mxu0  ;;  %v666_v37 = vpop.f32.mrf.mxu1 }
 0x10e   :  { %v618_v33 = vadd.f32 %v617_v29, %v2614_v23  ;;  %v739_v50 = vmax.f32 %v614_v38, 0.0  ;;  %v667_v59 = vadd.f32 %v666_v37, %v2621_v34  ;;  %v760_v11 = vpack.c.bf16 %v738_v61, %v732_v63  ;;  %v2668_v63 = vpop.permute.xlu1 %793 }
 0x10f   :  { %v619_v26 = vpop.f32.mrf.mxu0  ;;  %v670_v43 = vpop.f32.mrf.mxu1  ;;  %v740_v15 = vmax.f32 %v665_v4, 0.0 }
 0x110   :  { %v620_v35 = vadd.f32 %v619_v26, %v2614_v23  ;;  %v744_v42 = vmax.f32 %v618_v33, 0.0  ;;  %v671_v55 = vadd.f32 %v670_v43, %v2614_v23  ;;  %v761_v0 = vpack.c.bf16 %v739_v50, %v733_v53 }
 0x111   :  { %v621_v36 = vpop.f32.mrf.mxu0  ;;  %v672_v48 = vpop.f32.mrf.mxu1  ;;  %v741_v9 = vmax.f32 %v667_v59, 0.0  ;;  %v762_v18 = vpack.c.bf16 %v740_v15, %v734_v14 }
 0x112   :  { %v622_v39 = vadd.f32 %v621_v36, %v2618_v31  ;;  %v745_v44 = vmax.f32 %v620_v35, 0.0  ;;  %v673_v52 = vadd.f32 %v672_v48, %v2614_v23  ;;  %v746_v5 = vmax.f32 %v671_v55, 0.0 }
 0x113   :  { %v623_v41 = vpop.f32.mrf.mxu0  ;;  %v674_v56 = vpop.f32.mrf.mxu1  ;;  %v763_v17 = vpack.c.bf16 %v741_v9, %v735_v8 }
 0x114   :  { %v624_v45 = vadd.f32 %v623_v41, %v2618_v31  ;;  %v750_v46 = vmax.f32 %v622_v39, 0.0  ;;  %v675_v60 = vadd.f32 %v674_v56, %v2618_v31  ;;  %v747_v1 = vmax.f32 %v673_v52, 0.0 }
 0x115   :  { %v676_v62 = vpop.f32.mrf.mxu1 }
 0x116   :  { %v751_v51 = vmax.f32 %v624_v45, 0.0  ;;  %v766_v54 = vpack.c.bf16 %v750_v46, %v744_v42  ;;  %v677_v2 = vadd.f32 %v676_v62, %v2618_v31  ;;  %v752_v6 = vmax.f32 %v675_v60, 0.0  ;;  %v2666_v60 = vpop.permute.xlu0 %788 }
 0x117   :  { %v996_v62 = vlaneseq }
 0x118   :  { %v767_v57 = vpack.c.bf16 %v751_v51, %v745_v44  ;;  %v753_v10 = vmax.f32 %v677_v2, 0.0  ;;  %v768_v16 = vpack.c.bf16 %v752_v6, %v746_v5  ;;  %v2675_v6 = vpop.permute.xlu1 %783 }
 0x119   :  { %v997_v3 = vand.u32 127, %v996_v62  ;;  %vm2016_vm3 = vcmp.lt.s32.totalorder %v996_v62, 768 }
 0x11a   :  { %825 = vmatprep.subr.bf16.mxu1 %v767_v57  ;;  %v769_v13 = vpack.c.bf16 %v753_v10, %v747_v1  ;;  %v2670_v1 = vpop.permute.xlu0 %778 }
 0x11b   :  { %826 = vmatpush1.bf16.msra.mxu1 %v766_v54  ;;  %v1002_v10 = vadd.s32 640, %v997_v3 }
 0x11c   :  { %827 = vmatprep.subr.bf16.mxu1 %v761_v0 }
 0x11d   :  { %vm1008_vm2 = vcmp.lt.s32.totalorder %v1002_v10, 738 }
 0x11f   :  { %828 = vmatpush1.bf16.msra.mxu1 %v760_v11 }
 0x120   :  { %878 = vmatprep.subr.bf16.mxu1 %v769_v13 }
 0x122   :  { %2091 = vmatmul.mubr.msk.bf16.vlgmr.msra.gmra.mxu1 %vm806_vm1, %v2249_v12 }
 0x123   :  { %855 = vmatprep.mubr.bf16.mxu1 %v2291_v7  ;;  %879 = vmatpush1.bf16.msra.mxu1 %v768_v16 }
 0x124   :  { %880 = vmatprep.subr.bf16.mxu1 %v763_v17 }
 0x127   :  { %881 = vmatpush1.bf16.msra.mxu1 %v762_v18 }
 0x12a   :  { %2092 = vmatmul.mubr.msk.bf16.gmra.mxu1 %vm806_vm1, %v2250_v19 }
 0x12b   :  { %898 = vmatprep.mubr.bf16.mxu1 %v2291_v7 }
 0x132   :  { %2093 = vmatmul.mubr.msk.bf16.vlgmr.msra.gmra.mxu1 %vm806_vm1, %v2249_v12 }
 0x133   :  { %908 = vmatprep.mubr.bf16.mxu1 %v2291_v7 }
 0x13a   :  { %2094 = vmatmul.mubr.msk.bf16.gmra.mxu1 %vm806_vm1, %v2250_v19 }
 0x13b   :  { %951 = vmatprep.mubr.bf16.mxu1 %v2291_v7 }
 0x145   :  { %v713_v20 = vpop.f32.mrf.mxu0 }
 0x146   :  { %v714_v43 = vadd.f32 %v713_v20, %v2616_v25 }
 0x147   :  { %v715_v21 = vpop.f32.mrf.mxu0 }
 0x148   :  { %v716_v36 = vadd.f32 %v715_v21, %v2616_v25 }
 0x149   :  { %v717_v22 = vpop.f32.mrf.mxu0 }
 0x14a   :  { %v718_v38 = vadd.f32 %v717_v22, %v2621_v34  ;;  %v737_v45 = vmax.f32 %v716_v36, 0.0  ;;  %v2292_v36 = vmov 0.0  }
 0x14b   :  { %v719_v24 = vpop.f32.mrf.mxu0 }
 0x14c   :  { %v720_v30 = vadd.f32 %v719_v24, %v2621_v34  ;;  %v742_v47 = vmax.f32 %v718_v38, 0.0 }
 0x14d   :  { %v723_v27 = vpop.f32.mrf.mxu0 }
 0x14e   :  { %v724_v33 = vadd.f32 %v723_v27, %v2614_v23  ;;  %v743_v40 = vmax.f32 %v720_v30, 0.0 }
 0x14f   :  { %v725_v28 = vpop.f32.mrf.mxu0 }
 0x150   :  { %v726_v26 = vadd.f32 %v725_v28, %v2614_v23  ;;  %v748_v44 = vmax.f32 %v724_v33, 0.0  ;;  %v765_v49 = vpack.c.bf16 %v743_v40, %v737_v45  ;;  %v736_v23 = vmax.f32 %v714_v43, 0.0 }
 0x151   :  { %v727_v29 = vpop.f32.mrf.mxu0 }
 0x152   :  { %v728_v32 = vadd.f32 %v727_v29, %v2618_v31  ;;  %v749_v41 = vmax.f32 %v726_v26, 0.0  ;;  %v764_v50 = vpack.c.bf16 %v742_v47, %v736_v23 }
 0x153   :  { %v729_v35 = vpop.f32.mrf.mxu0 }
 0x154   :  { %v730_v37 = vadd.f32 %v729_v35, %v2618_v31  ;;  %v754_v39 = vmax.f32 %v728_v32, 0.0 }
 0x156   :  { %v755_v42 = vmax.f32 %v730_v37, 0.0  ;;  %v770_v48 = vpack.c.bf16 %v754_v39, %v748_v44  ;;  %v2709_v37 = vsel %vm1008_vm2, 1.0, %v2292_v36 }
 0x158   :  { %v771_v46 = vpack.c.bf16 %v755_v42, %v749_v41 }
 0x15a   :  { %931 = vmatprep.subr.bf16.mxu1 %v771_v46 }
 0x15b   :  { %932 = vmatpush1.bf16.msra.mxu1 %v770_v48 }
 0x15c   :  { %933 = vmatprep.subr.bf16.mxu1 %v765_v49 }
 0x15f   :  { %934 = vmatpush1.bf16.msra.mxu1 %v764_v50 }
 0x162   :  { %2095 = vmatmul.mubr.msk.bf16.vlgmr.msra.gmra.mxu1 %vm806_vm1, %v2249_v12 }
 0x163   :  { %961 = vmatprep.mubr.bf16.mxu1 %v2291_v7 }
 0x16a   :  { %2096 = vmatmul.mubr.msk.bf16.gmra.mxu1 %vm806_vm1, %v2250_v19 }
 0x16b   :  { %1349 = vmatprep.mubr.bf16.mxu1 %v2291_v7 }
 0x1e2   :  { %v847_v25 = vpop.f32.mrf.mxu1 }
 0x1e3   :  { %v848_v4 = vadd.f32 %v847_v25, %v2670_v1 }
 0x1e4   :  { %v849_v31 = vpop.f32.mrf.mxu1 }
 0x1e5   :  { %v850_v2 = vadd.f32 %v849_v31, %v2670_v1  ;;  %v2683_v14 = vmax.f32 %v848_v4, 0.0 }
 0x1e6   :  { %v851_v34 = vpop.f32.mrf.mxu1 }
 0x1e7   :  { %v2677_v8 = vmax.f32 %v850_v2, 0.0  ;;  %v852_v11 = vadd.f32 %v851_v34, %v2675_v6  ;;  %v1077_v28 = vmul.f32 %v2683_v14, %v2683_v14 }
 0x1e8   :  { %v853_v51 = vpop.f32.mrf.mxu1 }
 0x1e9   :  { %v854_v12 = vadd.f32 %v853_v51, %v2675_v6  ;;  %v1078_v19 = vmul.f32 %v2677_v8, %v2677_v8  ;;  %v2692_v22 = vmax.f32 %v852_v11, 0.0  ;;  %v1045_v38 = vadd.f32 %v2677_v8, %v2683_v14 }
 0x1ea   :  { %v857_v52 = vpop.f32.mrf.mxu1 }
 0x1eb   :  { %v858_v15 = vadd.f32 %v857_v52, %v2666_v60  ;;  %v2694_v24 = vmax.f32 %v854_v12, 0.0  ;;  %v2713_v39 = vadd.f32 %v1078_v19, %v1077_v28  ;;  %v2720_v43 = vmul.f32 %v2692_v22, %v2692_v22 }
 0x1ec   :  { %v859_v53 = vpop.f32.mrf.mxu1 }
 0x1ed   :  { %v860_v9 = vadd.f32 %v859_v53, %v2666_v60  ;;  %v2700_v29 = vmax.f32 %v858_v15, 0.0  ;;  %v1052_v44 = vadd.f32 %v2694_v24, %v2692_v22  ;;  %v2736_v25 = vmul.f32 %v2694_v24, %v2694_v24 }
 0x1ee   :  { %v861_v54 = vpop.f32.mrf.mxu1 }
 0x1ef   :  { %v862_v17 = vadd.f32 %v861_v54, %v2668_v63  ;;  %v2690_v20 = vmax.f32 %v860_v9, 0.0  ;;  %v1089_v47 = vmul.f32 %v2700_v29, %v2700_v29 }
 0x1f0   :  { %v863_v55 = vpop.f32.mrf.mxu1 }
 0x1f1   :  { %v864_v13 = vadd.f32 %v863_v55, %v2668_v63  ;;  %v2703_v32 = vmax.f32 %v862_v17, 0.0  ;;  %v1090_v40 = vmul.f32 %v2690_v20, %v2690_v20  ;;  %v1059_v45 = vadd.f32 %v2690_v20, %v2700_v29 }
 0x1f2   :  { %v900_v56 = vpop.f32.mrf.mxu1 }
 0x1f3   :  { %v2696_v27 = vmax.f32 %v864_v13, 0.0  ;;  %v901_v30 = vadd.f32 %v900_v56, %v2670_v1  ;;  %v1095_v31 = vmul.f32 %v2703_v32, %v2703_v32  ;;  %v1115_v52 = vadd.f32 %v1090_v40, %v1089_v47 }
 0x1f4   :  { %v902_v57 = vpop.f32.mrf.mxu1 }
 0x1f5   :  { %v1096_v46 = vmul.f32 %v2696_v27, %v2696_v27  ;;  %v2730_v48 = vmax.f32 %v901_v30, 0.0  ;;  %v903_v49 = vadd.f32 %v902_v57, %v2670_v1  ;;  %v1066_v57 = vadd.f32 %v2696_v27, %v2703_v32 }
 0x1f6   :  { %v904_v58 = vpop.f32.mrf.mxu1 }
 0x1f7   :  { %v905_v23 = vadd.f32 %v904_v58, %v2675_v6  ;;  %v1122_v58 = vadd.f32 %v1096_v46, %v1095_v31  ;;  %v1046_v2 = vadd.f32 %v1045_v38, %v2730_v48  ;;  %v1079_v3 = vmul.f32 %v2730_v48, %v2730_v48 }
 0x1f8   :  { %v2664_v59 = vpop.f32.mrf.mxu1  ;;  %v2756_v4 = vmax.f32 %v903_v49, 0.0 }
 0x1fa   :  { %v910_v61 = vpop.f32.mrf.mxu1  ;;  %v1080_v31 = vmul.f32 %v2756_v4, %v2756_v4 }
 0x1fb   :  { %v911_v18 = vadd.f32 %v910_v61, %v2666_v60  ;;  %v907_v61 = vadd.f32 %v2664_v59, %v2675_v6 }
 0x1fc   :  { %v912_v0 = vpop.f32.mrf.mxu1 }
 0x1fd   :  { %v2705_v33 = vmax.f32 %v911_v18, 0.0  ;;  %v913_v35 = vadd.f32 %v912_v0, %v2666_v60  ;;  %v2770_v19 = vmax.f32 %v907_v61, 0.0 }
 0x1fe   :  { %v914_v5 = vpop.f32.mrf.mxu1 }
 0x1ff   :  { %v915_v41 = vadd.f32 %v914_v5, %v2668_v63  ;;  %v1060_v34 = vadd.f32 %v1059_v45, %v2705_v33  ;;  %v2741_v51 = vmax.f32 %v913_v35, 0.0  ;;  %v1091_v53 = vmul.f32 %v2705_v33, %v2705_v33 }
 0x200   :  { %v916_v16 = vpop.f32.mrf.mxu1  ;;  %v2758_v5 = vmax.f32 %v905_v23, 0.0 }
 0x201   :  { %v2745_v54 = vmax.f32 %v915_v41, 0.0  ;;  %v917_v55 = vadd.f32 %v916_v16, %v2668_v63  ;;  %v1092_v10 = vmul.f32 %v2741_v51, %v2741_v51  ;;  %v1061_v59 = vadd.f32 %v1060_v34, %v2741_v51 }
 0x202   :  { %v1116_v18 = vadd.f32 %v1115_v52, %v1091_v53  ;;  %v1047_v52 = vadd.f32 %v1046_v2, %v2756_v4  ;;  %v1102_v53 = vadd.f32 %v2713_v39, %v1079_v3 }
 0x203   :  { %v1067_v13 = vadd.f32 %v1066_v57, %v2745_v54  ;;  %v2767_v15 = vmax.f32 %v917_v55, 0.0 }
 0x222   :  { %v953_v21 = vpop.f32.mrf.mxu1 }
 0x223   :  { %v954_v38 = vadd.f32 %v953_v21, %v2670_v1 }
 0x224   :  { %v955_v26 = vpop.f32.mrf.mxu1 }
 0x225   :  { %v956_v16 = vadd.f32 %v955_v26, %v2670_v1  ;;  %v1068_v1 = vadd.f32 %v1067_v13, %v2767_v15  ;;  %v2799_v34 = vmax.f32 %v954_v38, 0.0  ;;  %v1108_v13 = vadd.f32 %v2736_v25, %v2720_v43 }
 0x226   :  { %v957_v42 = vpop.f32.mrf.mxu1 }
 0x227   :  { %v958_v40 = vadd.f32 %v957_v42, %v2675_v6  ;;  %v2789_v23 = vmax.f32 %v956_v16, 0.0  ;;  %v1048_v16 = vadd.f32 %v1047_v52, %v2799_v34 }
 0x228   :  { %v959_v50 = vpop.f32.mrf.mxu1 }
 0x229   :  { %v960_v28 = vadd.f32 %v959_v50, %v2675_v6  ;;  %v1117_v6 = vadd.f32 %v1116_v18, %v1092_v10  ;;  %v2803_v55 = vmax.f32 %v958_v40, 0.0  ;;  %v1081_v18 = vmul.f32 %v2799_v34, %v2799_v34 }
 0x22a   :  { %v963_v56 = vpop.f32.mrf.mxu1 }
 0x22b   :  { %v964_v0 = vadd.f32 %v963_v56, %v2666_v60  ;;  %v2792_v21 = vmax.f32 %v960_v28, 0.0  ;;  %v1086_v28 = vmul.f32 %v2770_v19, %v2770_v19 }
 0x22c   :  { %v965_v9 = vpop.f32.mrf.mxu1 }
 0x22d   :  { %v2762_v11 = vmax.f32 %v964_v0, 0.0  ;;  %v966_v12 = vadd.f32 %v965_v9, %v2666_v60  ;;  %v1053_v60 = vadd.f32 %v1052_v44, %v2758_v5  ;;  %v1097_v44 = vmul.f32 %v2745_v54, %v2745_v54 }
 0x22e   :  { %v967_v17 = vpop.f32.mrf.mxu1  ;;  %v1085_v0 = vmul.f32 %v2758_v5, %v2758_v5  ;;  %v1098_v9 = vmul.f32 %v2767_v15, %v2767_v15  ;;  %v1032_v3 = vmul.f32 %v2709_v37, %v2792_v21 }
 0x22f   :  { %v2773_v30 = vmax.f32 %v966_v12, 0.0  ;;  %v968_v35 = vadd.f32 %v967_v17, %v2668_v63  ;;  %v1062_v45 = vadd.f32 %v1061_v59, %v2762_v11  ;;  %v1093_v49 = vmul.f32 %v2762_v11, %v2762_v11 }
 0x230   :  { %v969_v41 = vpop.f32.mrf.mxu1  ;;  %v1054_v10 = vadd.f32 %v1053_v60, %v2770_v19  ;;  %v1123_v2 = vadd.f32 %v1122_v58, %v1097_v44  ;;  %v1026_v59 = vmul.f32 %v2709_v37, %v2789_v23  ;;  %v1103_v60 = vadd.f32 %v1102_v53, %v1080_v31 }
 0x231   :  { %v2780_v26 = vmax.f32 %v968_v35, 0.0  ;;  %v970_v46 = vadd.f32 %v969_v41, %v2668_v63  ;;  %v1038_v47 = vmul.f32 %v2709_v37, %v2773_v30  ;;  %v1118_v61 = vadd.f32 %v1117_v6, %v1093_v49 }
 0x232   :  { %v1055_v17 = vadd.f32 %v1054_v10, %v2803_v55  ;;  %v1124_v35 = vadd.f32 %v1123_v2, %v1098_v9  ;;  %v1109_v38 = vadd.f32 %v1108_v13, %v1085_v0  ;;  %v1049_v43 = vadd.f32 %v1048_v16, %v1026_v59 }
 0x233   :  { %v2794_v42 = vmax.f32 %v970_v46, 0.0  ;;  %v1063_v50 = vadd.f32 %v1062_v45, %v1038_v47  ;;  %v1094_v63 = vmul.f32 %v1038_v47, %v2773_v30  ;;  %v1069_v57 = vadd.f32 %v1068_v1, %v2780_v26 }
 0x234   :  { %v1099_v58 = vmul.f32 %v2780_v26, %v2780_v26  ;;  %v1056_v40 = vadd.f32 %v1055_v17, %v1032_v3  ;;  %v1082_v41 = vmul.f32 %v1026_v59, %v2789_v23  ;;  %v1104_v46 = vadd.f32 %v1103_v60, %v1081_v18 }
 0x235   :  { %1064 = vadd.xlane.f32.xlu0 %v1063_v50  ;;  %v1044_v56 = vmul.f32 %v2709_v37, %v2794_v42  ;;  %v1119_v39 = vadd.f32 %v1118_v61, %v1094_v63  ;;  %v1087_v47 = vmul.f32 %v2803_v55, %v2803_v55  ;;  %v1088_v1 = vmul.f32 %v1032_v3, %v2792_v21 }
 0x236   :  { %v1125_v45 = vadd.f32 %v1124_v35, %v1099_v58  ;;  %v1105_v44 = vadd.f32 %v1104_v46, %v1082_v41  ;;  %v1110_v6 = vadd.f32 %v1109_v38, %v1086_v28 }
 0x237   :  { %v1070_v12 = vadd.f32 %v1069_v57, %v1044_v56  ;;  %v1100_v25 = vmul.f32 %v1044_v56, %v2794_v42 }
 0x238   :  { %v1111_v50 = vadd.f32 %v1110_v6, %v1087_v47 }
 0x239   :  { %1071 = vadd.xlane.f32.xlu1 %v1070_v12  ;;  %1120 = vadd.xlane.f32.xlu0 %v1119_v39  ;;  %v1126_v49 = vadd.f32 %v1125_v45, %v1100_v25 }
 0x23a   :  { %v1112_v63 = vadd.f32 %v1111_v50, %v1088_v1  ;;  %v1147_v1 = vld [vmem:[%s3181_s7 + $0x10] sm:$0xff] }
 0x23d   :  { %1057 = vadd.xlane.f32.xlu0 %v1056_v40  ;;  %1050 = vadd.xlane.f32.xlu1 %v1049_v43 }
 0x241   :  { %1127 = vadd.xlane.f32.xlu0 %v1126_v49  ;;  %1106 = vadd.xlane.f32.xlu1 %v1105_v44 }
 0x245   :  { %1113 = vadd.xlane.f32.xlu0 %v1112_v63  ;;  %v1148_v63 = vld [vmem:[%s3181_s7 + $0x18] sm:$0xff] }
 0x2be   :  { %v1065_v31 = vpop.xlane.xlu0 %1064 }
 0x2bf   :  { %v1075_v52 = vmul.f32 0.0013550136, %v1065_v31  ;;  %v1145_v31 = vld [vmem:[%s3181_s7] sm:$0xff] }
 0x2c1   :  { %v1135_v57 = vmul.f32 %v1075_v52, %v1075_v52 }
 0x2c2   :  { %v1072_v53 = vpop.xlane.xlu1 %1071  ;;  %v1121_v56 = vpop.xlane.xlu0 %1120 }
 0x2c3   :  { %v1131_v61 = vmul.f32 0.0013550136, %v1121_v56  ;;  %v1076_v9 = vmul.f32 0.0013550136, %v1072_v53 }
 0x2c5   :  { %v1139_v0 = vsub.f32 %v1131_v61, %v1135_v57  ;;  %v1136_v3 = vmul.f32 %v1076_v9, %v1076_v9  ;;  %v1146_v61 = vld [vmem:[%s3181_s7 + $0x8] sm:$0xff] }
 0x2c6   :  { %v1058_v10 = vpop.xlane.xlu0 %1057  ;;  %v1051_v2 = vpop.xlane.xlu1 %1050 }
 0x2c7   :  { %v1143_v12 = vmax.f32 %v1139_v0, 0.0  ;;  %v1073_v39 = vmul.f32 0.0013550136, %v1051_v2  ;;  %v1074_v13 = vmul.f32 0.0013550136, %v1058_v10 }
 0x2c9   :  { %v1151_v59 = vadd.f32 1e-05, %v1143_v12  ;;  %v1133_v58 = vmul.f32 %v1073_v39, %v1073_v39  ;;  %v1134_v40 = vmul.f32 %v1074_v13, %v1074_v13 }
 0x2ca   :  { %v1128_v16 = vpop.xlane.xlu0 %1127  ;;  %v1107_v17 = vpop.xlane.xlu1 %1106 }
 0x2cb   :  { %2253 = vrsqrt.f32 %v1151_v59  ;;  %v1132_v18 = vmul.f32 0.0013550136, %v1128_v16  ;;  %v1129_v28 = vmul.f32 0.0013550136, %v1107_v17  ;;  %v1161_v16 = vld [vmem:[%s3182_s8] sm:$0xff] }
 0x2cd   :  { %v1140_v35 = vsub.f32 %v1132_v18, %v1136_v3  ;;  %v1137_v60 = vsub.f32 %v1129_v28, %v1133_v58  ;;  %v1163_v3 = vld [vmem:[%s3182_s8 + $0x10] sm:$0xff]  ;;  %v1164_v28 = vld [vmem:[%s3182_s8 + $0x18] sm:$0xff] }
 0x2ce   :  { %v1114_v38 = vpop.xlane.xlu0 %1113 }
 0x2cf   :  { %v1144_v43 = vmax.f32 %v1140_v35, 0.0  ;;  %v1141_v25 = vmax.f32 %v1137_v60, 0.0  ;;  %v1130_v41 = vmul.f32 0.0013550136, %v1114_v38  ;;  %v1162_v60 = vld [vmem:[%s3182_s8 + $0x8] sm:$0xff] }
 0x2d1   :  { %v1152_v45 = vadd.f32 1e-05, %v1144_v43  ;;  %v1149_v46 = vadd.f32 1e-05, %v1141_v25  ;;  %v1138_v47 = vsub.f32 %v1130_v41, %v1134_v40  ;;  %v1279_v40 = vld [vmem:[%s3180_s6 + $0x10] sm:$0xff] }
 0x2d3   :  { %2255 = vrsqrt.f32 %v1152_v45  ;;  %v1142_v49 = vmax.f32 %v1138_v47, 0.0 }
 0x2d4   :  { %2257 = vrsqrt.f32 %v1149_v46 }
 0x2d5   :  { %v1150_v44 = vadd.f32 1e-05, %v1142_v49 }
 0x2d7   :  { %2259 = vrsqrt.f32 %v1150_v44 }
 0x2d8   :  { %v2254_v6 = vpop.eup %2253 }
 0x2d9   :  { %v1159_v50 = vmul.f32 %v2254_v6, %v1147_v1 }
 0x2db   :  { %1185 = vperm.xlu1 %2198, %v1159_v50   ;;  %v1167_v12 = vmul.f32 %v1159_v50, %v1075_v52  ;;  %v1280_v52 = vld [vmem:[%s3180_s6 + $0x18] sm:$0xff] }
 0x2dd   :  { %v1171_v17 = vsub.f32 %v1163_v3, %v1167_v12 }
 0x2e0   :  { %v2256_v53 = vpop.eup %2255 }
 0x2e1   :  { %v2258_v56 = vpop.eup %2257  ;;  %v1160_v57 = vmul.f32 %v2256_v53, %v1148_v63 }
 0x2e2   :  { %v1157_v0 = vmul.f32 %v2258_v56, %v1145_v31 }
 0x2e3   :  { %1190 = vperm.xlu0 %2197, %v1160_v57   ;;  %v1168_v18 = vmul.f32 %v1160_v57, %v1076_v9  ;;  %v1278_v9 = vld [vmem:[%s3180_s6 + $0x8] sm:$0xff] }
 0x2e4   :  { %v2260_v10 = vpop.eup %2259  ;;  %v1165_v59 = vmul.f32 %v1157_v0, %v1073_v39 }
 0x2e5   :  { %v1158_v2 = vmul.f32 %v2260_v10, %v1146_v61  ;;  %v1172_v39 = vsub.f32 %v1164_v28, %v1168_v18 }
 0x2e6   :  { %v1169_v58 = vsub.f32 %v1161_v16, %v1165_v59 }
 0x2e7   :  { %1180 = vperm.xlu1 %2198, %v1158_v2   ;;  %1175 = vperm.xlu0 %2197, %v1157_v0   ;;  %v1166_v35 = vmul.f32 %v1158_v2, %v1074_v13  ;;  %v1277_v13 = vld [vmem:[%s3180_s6] sm:$0xff] }
 0x2e9   :  { %v1170_v38 = vsub.f32 %v1162_v60, %v1166_v35 }
 0x2eb   :  { %1229 = vperm.xlu1 %2198, %v1171_v17   ;;  %1219 = vperm.xlu0 %2197, %v1169_v58  }
 0x2ef   :  { %1234 = vperm.xlu1 %2198, %v1172_v39   ;;  %1298 = vperm.xlu0 %2197, %v1280_v52  }
 0x2f3   :  { %1224 = vperm.xlu1 %2198, %v1170_v38   ;;  %1288 = vperm.xlu0 %2197, %v1278_v9  }
 0x2f7   :  { %1293 = vperm.xlu1 %2198, %v1279_v40  }
 0x2fb   :  { %1283 = vperm.xlu1 %2198, %v1277_v13  }
 0x356   :  { %v1186_v43 = vpop.permute.xlu1 %1185 }
 0x357   :  { %v1206_v47 = vmul.f32 %v1186_v43, %v2690_v20  ;;  %v1208_v49 = vmul.f32 %v1186_v43, %v2741_v51  ;;  %v1205_v44 = vmul.f32 %v1186_v43, %v2700_v29  ;;  %v1207_v50 = vmul.f32 %v1186_v43, %v2705_v33 }
 0x358   :  { %v1210_v63 = vmul.f32 %v1186_v43, %v2773_v30  ;;  %v1209_v13 = vmul.f32 %v1186_v43, %v2762_v11 }
 0x35e   :  { %v1191_v25 = vpop.permute.xlu0 %1190 }
 0x35f   :  { %v1212_v1 = vmul.f32 %v1191_v25, %v2696_v27  ;;  %v1214_v6 = vmul.f32 %v1191_v25, %v2767_v15  ;;  %v1211_v31 = vmul.f32 %v1191_v25, %v2703_v32  ;;  %v1213_v53 = vmul.f32 %v1191_v25, %v2745_v54 }
 0x360   :  { %v1216_v56 = vmul.f32 %v1191_v25, %v2794_v42  ;;  %v1215_v20 = vmul.f32 %v1191_v25, %v2780_v26 }
 0x362   :  { %v2868_v41 = vpop.permute.xlu1 %1180  ;;  %v2870_v45 = vpop.permute.xlu0 %1175 }
 0x363   :  { %v1194_v51 = vmul.f32 %v2870_v45, %v2677_v8  ;;  %v1200_v27 = vmul.f32 %v2868_v41, %v2694_v24  ;;  %v1196_v29 = vmul.f32 %v2870_v45, %v2756_v4  ;;  %v1202_v33 = vmul.f32 %v2868_v41, %v2770_v19 }
 0x364   :  { %v1193_v4 = vmul.f32 %v2870_v45, %v2683_v14  ;;  %v1199_v19 = vmul.f32 %v2868_v41, %v2692_v22  ;;  %v1195_v0 = vmul.f32 %v2870_v45, %v2730_v48  ;;  %v1201_v10 = vmul.f32 %v2868_v41, %v2758_v5 }
 0x365   :  { %v1204_v5 = vmul.f32 %v2868_v41, %v2792_v21 }
 0x366   :  { %v2872_v46 = vpop.permute.xlu1 %1229  ;;  %v1220_v42 = vpop.permute.xlu0 %1219 }
 0x367   :  { %v1250_v32 = vadd.f32 %v2872_v46, %v1206_v47  ;;  %v1252_v54 = vadd.f32 %v2872_v46, %v1208_v49  ;;  %v1249_v30 = vadd.f32 %v2872_v46, %v1205_v44  ;;  %v1251_v26 = vadd.f32 %v2872_v46, %v1207_v50  ;;  %v2251_v49 = vld [vmem:[%s3179_s5] sm:$0xff]  }
 0x368   :  { %v1238_v17 = vadd.f32 %v1220_v42, %v1194_v51  ;;  %v1240_v58 = vadd.f32 %v1220_v42, %v1196_v29  ;;  %v1237_v18 = vadd.f32 %v1220_v42, %v1193_v4  ;;  %v1239_v48 = vadd.f32 %v1220_v42, %v1195_v0 }
 0x369   :  { %v1254_v38 = vadd.f32 %v2872_v46, %v1210_v63  ;;  %v1198_v44 = vmul.f32 %v2870_v45, %v2789_v23  ;;  %v1197_v50 = vmul.f32 %v2870_v45, %v2799_v34 }
 0x36a   :  { %v1235_v15 = vpop.permute.xlu1 %1234 }
 0x36b   :  { %v1256_v8 = vadd.f32 %v1235_v15, %v1212_v1  ;;  %v1258_v57 = vadd.f32 %v1235_v15, %v1214_v6  ;;  %v1255_v61 = vadd.f32 %v1235_v15, %v1211_v31  ;;  %v1257_v24 = vadd.f32 %v1235_v15, %v1213_v53  ;;  %v2936_v53 = vpop.permute.xlu0 %1298 }
 0x36c   :  { %v1260_v28 = vadd.f32 %v1235_v15, %v1216_v56  ;;  %v1259_v25 = vadd.f32 %v1235_v15, %v1215_v20  ;;  %v1253_v1 = vadd.f32 %v2872_v46, %v1209_v13  ;;  %v1203_v6 = vmul.f32 %v2868_v41, %v2803_v55  ;;  %v2252_v41 = vld [vmem:[%s3179_s5 + $0x8] sm:$0xff]  }
 0x36d   :  { %v1268_v2 = vpack.c.bf16 %v1256_v8, %v1250_v32  ;;  %v1270_v12 = vpack.c.bf16 %v1258_v57, %v1252_v54  ;;  %v1267_v59 = vpack.c.bf16 %v1255_v61, %v1249_v30  ;;  %v1269_v3 = vpack.c.bf16 %v1257_v24, %v1251_v26 }
 0x36e   :  { %v1225_v16 = vpop.permute.xlu1 %1224  ;;  %v1272_v47 = vpack.c.bf16 %v1260_v28, %v1254_v38  ;;  %v1242_v11 = vadd.f32 %v1220_v42, %v1198_v44  ;;  %v1271_v43 = vpack.c.bf16 %v1259_v25, %v1253_v1  ;;  %v1241_v31 = vadd.f32 %v1220_v42, %v1197_v50 }
 0x36f   :  { %1329 = vmatprep.subr.bf16.mxu1 %v1268_v2  ;;  %1382 = vmatprep.subr.bf16.mxu0 %v1270_v12  ;;  %v1244_v14 = vadd.f32 %v1225_v16, %v1200_v27  ;;  %v1246_v52 = vadd.f32 %v1225_v16, %v1202_v33  ;;  %v1243_v22 = vadd.f32 %v1225_v16, %v1199_v19  ;;  %v1289_v32 = vpop.permute.xlu0 %1288 }
 0x370   :  { %1330 = vmatpush1.bf16.msra.mxu1 %v1267_v59  ;;  %1383 = vmatpush1.bf16.msra.mxu0 %v1269_v3  ;;  %v1245_v39 = vadd.f32 %v1225_v16, %v1201_v10  ;;  %v1248_v21 = vadd.f32 %v1225_v16, %v1204_v5  ;;  %v1247_v63 = vadd.f32 %v1225_v16, %v1203_v6 }
 0x371   :  { %v1262_v35 = vpack.c.bf16 %v1244_v14, %v1238_v17  ;;  %v1264_v60 = vpack.c.bf16 %v1246_v52, %v1240_v58  ;;  %v1261_v9 = vpack.c.bf16 %v1243_v22, %v1237_v18 }
 0x372   :  { %v1263_v40 = vpack.c.bf16 %v1245_v39, %v1239_v48  ;;  %v1266_v23 = vpack.c.bf16 %v1248_v21, %v1242_v11  ;;  %v1265_v55 = vpack.c.bf16 %v1247_v63, %v1241_v31  ;;  %v2934_v34 = vpop.permute.xlu1 %1293 }
 0x373   :  { %1331 = vmatprep.subr.bf16.mxu1 %v1262_v35  ;;  %1384 = vmatprep.subr.bf16.mxu0 %v1264_v60 }
 0x374   :  { %1332 = vmatpush1.bf16.msra.mxu1 %v1261_v9  ;;  %1385 = vmatpush1.bf16.msra.mxu0 %v1263_v40 }
 0x375   :  { %1435 = vmatprep.subr.bf16.mxu1 %v1272_v47 }
 0x376   :  { %v2938_v29 = vpop.permute.xlu1 %1283 }
 0x377   :  { %2100 = vmatmul.mubr.msk.bf16.vlgmr.msra.gmra.mxu1 %vm806_vm1, %v2251_v49  ;;  %2102 = vmatmul.mubr.msk.bf16.vlgmr.msra.gmra.mxu0 %vm806_vm1, %v2251_v49 }
 0x378   :  { %1436 = vmatpush1.bf16.msra.mxu1 %v1271_v43  ;;  %1359 = vmatprep.mubr.bf16.mxu1 %v2291_v7 }
 0x379   :  { %1437 = vmatprep.subr.bf16.mxu1 %v1266_v23  ;;  %1412 = vmatprep.mubr.bf16.mxu0 %v2291_v7 }
 0x37c   :  { %1438 = vmatpush1.bf16.msra.mxu1 %v1265_v55 }
 0x37f   :  { %2101 = vmatmul.mubr.msk.bf16.gmra.mxu1 %vm806_vm1, %v2252_v41  ;;  %2103 = vmatmul.mubr.msk.bf16.gmra.mxu0 %vm806_vm1, %v2252_v41 }
 0x380   :  { %1455 = vmatprep.mubr.bf16.mxu1 %v2291_v7  ;;  %1818 = vmatprep.mubr.f32.mxu0 %v2292_v36 }
 0x387   :  { %2104 = vmatmul.mubr.msk.bf16.vlgmr.msra.gmra.mxu1 %vm806_vm1, %v2251_v49 }
 0x388   :  { %1465 = vmatprep.mubr.bf16.mxu1 %v2291_v7 }
 0x38f   :  { %2105 = vmatmul.mubr.msk.bf16.gmra.mxu1 %vm806_vm1, %v2252_v41 }
 0x390   :  { %1889 = vmatprep.mubr.f32.mxu1 %v2292_v36 }
 0x437   :  { %v1351_v45 = vpop.f32.mrf.mxu1  ;;  %v1404_v46 = vpop.f32.mrf.mxu0 }
 0x438   :  { %v1352_v30 = vadd.f32 %v1351_v45, %v2938_v29  ;;  %v1405_v2 = vadd.f32 %v1404_v46, %v2938_v29 }
 0x439   :  { %v1353_v56 = vpop.f32.mrf.mxu1  ;;  %v1406_v20 = vpop.f32.mrf.mxu0 }
 0x43a   :  { %v1354_v15 = vadd.f32 %v1353_v56, %v2938_v29  ;;  %v2945_v19 = vmax.f32 %v1352_v30, 0.0  ;;  %v2967_v39 = vmax.f32 %v1405_v2, 0.0  ;;  %v2979_v40 = vadd.f32 %v1406_v20, %v2938_v29 }
 0x43b   :  { %v1355_v51 = vpop.f32.mrf.mxu1  ;;  %v1408_v27 = vpop.f32.mrf.mxu0 }
 0x43c   :  { %v2942_v8 = vmax.f32 %v1354_v15, 0.0  ;;  %v1356_v57 = vadd.f32 %v1355_v51, %v1289_v32  ;;  %v1409_v0 = vadd.f32 %v1408_v27, %v1289_v32  ;;  %v1556_v52 = vmul.f32 %v2945_v19, %v2945_v19 }
 0x43d   :  { %v1357_v33 = vpop.f32.mrf.mxu1  ;;  %v1410_v7 = vpop.f32.mrf.mxu0 }
 0x43e   :  { %v1358_v26 = vadd.f32 %v1357_v33, %v1289_v32  ;;  %v1557_v3 = vmul.f32 %v2942_v8, %v2942_v8  ;;  %v2953_v16 = vmax.f32 %v1356_v57, 0.0  ;;  %v2963_v22 = vmax.f32 %v1409_v0, 0.0 }
 0x43f   :  { %v1361_v54 = vpop.f32.mrf.mxu1  ;;  %v1414_v61 = vpop.f32.mrf.mxu0  ;;  %v2974_v9 = vadd.f32 %v2942_v8, %v2945_v19  ;;  %v1411_v13 = vadd.f32 %v1410_v7, %v1289_v32 }
 0x440   :  { %v2947_v10 = vmax.f32 %v1358_v26, 0.0  ;;  %v1362_v12 = vadd.f32 %v1361_v54, %v2934_v34  ;;  %v1415_v58 = vadd.f32 %v1414_v61, %v2934_v34  ;;  %v2976_v38 = vadd.f32 %v1557_v3, %v1556_v52 }
 0x441   :  { %v1363_v42 = vpop.f32.mrf.mxu1  ;;  %v1416_v17 = vpop.f32.mrf.mxu0  ;;  %v1562_v6 = vmul.f32 %v2953_v16, %v2953_v16  ;;  %v1564_v11 = vmul.f32 %v2963_v22, %v2963_v22  ;;  %v3002_v46 = vmax.f32 %v1411_v13, 0.0 }
 0x442   :  { %v1364_v24 = vadd.f32 %v1363_v42, %v2934_v34  ;;  %v1531_v48 = vadd.f32 %v2947_v10, %v2953_v16  ;;  %v2969_v5 = vmax.f32 %v1362_v12, 0.0  ;;  %v2981_v47 = vmax.f32 %v1415_v58, 0.0 }
 0x443   :  { %v1365_v4 = vpop.f32.mrf.mxu1  ;;  %v1418_v25 = vpop.f32.mrf.mxu0  ;;  %v1417_v23 = vadd.f32 %v1416_v17, %v2934_v34  ;;  %v1563_v45 = vmul.f32 %v2947_v10, %v2947_v10 }
 0x444   :  { %v2956_v18 = vmax.f32 %v1364_v24, 0.0  ;;  %v1366_v35 = vadd.f32 %v1365_v4, %v2936_v53  ;;  %v1532_v50 = vadd.f32 %v1531_v48, %v2963_v22  ;;  %v1568_v63 = vmul.f32 %v2969_v5, %v2969_v5 }
 0x445   :  { %v1367_v59 = vpop.f32.mrf.mxu1  ;;  %v1419_v55 = vadd.f32 %v1418_v25, %v2936_v53  ;;  %v1420_v56 = vpop.f32.mrf.mxu0  ;;  %v1570_v27 = vmul.f32 %v2981_v47, %v2981_v47  ;;  %v1587_v17 = vadd.f32 %v1563_v45, %v1562_v6 }
 0x446   :  { %v1368_v28 = vadd.f32 %v1367_v59, %v2936_v53  ;;  %v1538_v49 = vadd.f32 %v2956_v18, %v2969_v5  ;;  %v1569_v44 = vmul.f32 %v2956_v18, %v2956_v18  ;;  %v2997_v31 = vmax.f32 %v1366_v35, 0.0 }
 0x447   :  { %v2959_v14 = vpop.f32.mrf.mxu1  ;;  %v1533_v57 = vadd.f32 %v1532_v50, %v3002_v46  ;;  %v3021_v24 = vmax.f32 %v1419_v55, 0.0  ;;  %v1421_v4 = vadd.f32 %v1420_v56, %v2936_v53 }
 0x448   :  { %v2987_v21 = vmax.f32 %v1368_v28, 0.0  ;;  %v1594_v33 = vadd.f32 %v1569_v44, %v1568_v63  ;;  %v1539_v54 = vadd.f32 %v1538_v49, %v2981_v47  ;;  %v1574_v61 = vmul.f32 %v2997_v31, %v2997_v31 }
 0x449   :  { %v1459_v60 = vpop.f32.mrf.mxu1  ;;  %v1576_v44 = vmul.f32 %v3021_v24, %v3021_v24 }
 0x44a   :  { %v1575_v15 = vmul.f32 %v2987_v21, %v2987_v21  ;;  %v1545_v30 = vadd.f32 %v2987_v21, %v2997_v31  ;;  %v1595_v48 = vadd.f32 %v1594_v33, %v1570_v27 }
 0x44b   :  { %v1461_v1 = vpop.f32.mrf.mxu1 }
 0x44c   :  { %v1462_v43 = vadd.f32 %v1461_v1, %v1289_v32  ;;  %v1601_v58 = vadd.f32 %v1575_v15, %v1574_v61  ;;  %v1546_v49 = vadd.f32 %v1545_v30, %v3021_v24  ;;  %v3039_v1 = vmax.f32 %v1421_v4, 0.0 }
 0x44d   :  { %v1463_v41 = vpop.f32.mrf.mxu1  ;;  %v1458_v30 = vadd.f32 %v2959_v14, %v2938_v29 }
 0x44e   :  { %v3004_v20 = vmax.f32 %v1462_v43, 0.0  ;;  %v1464_v51 = vadd.f32 %v1463_v41, %v1289_v32  ;;  %v3017_v32 = vmax.f32 %v1417_v23, 0.0  ;;  %v1460_v41 = vadd.f32 %v1459_v60, %v2938_v29 }
 0x44f   :  { %v1467_v7 = vpop.f32.mrf.mxu1  ;;  %v1602_v56 = vadd.f32 %v1601_v58, %v1576_v44  ;;  %v1547_v15 = vadd.f32 %v1546_v49, %v3039_v1  ;;  %v1525_v29 = vadd.f32 %v2974_v9, %v2967_v39 }
 0x450   :  { %v3013_v26 = vmax.f32 %v1464_v51, 0.0  ;;  %v1468_v42 = vadd.f32 %v1467_v7, %v2934_v34  ;;  %v1534_v3 = vadd.f32 %v1533_v57, %v3004_v20  ;;  %v1540_v52 = vadd.f32 %v1539_v54, %v3017_v32 }
 0x451   :  { %v1469_v0 = vpop.f32.mrf.mxu1  ;;  %v1588_v51 = vadd.f32 %v1587_v17, %v1564_v11  ;;  %v1577_v54 = vmul.f32 %v3039_v1, %v3039_v1  ;;  %v1566_v60 = vmul.f32 %v3004_v20, %v3004_v20  ;;  %v3067_v4 = vmax.f32 %v1460_v41, 0.0 }
 0x452   :  { %v3024_v2 = vmax.f32 %v1468_v42, 0.0  ;;  %v1470_v12 = vadd.f32 %v1469_v0, %v2934_v34  ;;  %v1511_v59 = vmul.f32 %v2709_v37, %v3013_v26  ;;  %v1571_v34 = vmul.f32 %v3017_v32, %v3017_v32 }
 0x453   :  { %v1471_v28 = vpop.f32.mrf.mxu1  ;;  %v1603_v0 = vadd.f32 %v1602_v56, %v1577_v54  ;;  %v1505_v44 = vmul.f32 %v2709_v37, %v3067_v4 }
 0x454   :  { %v3031_v35 = vmax.f32 %v1470_v12, 0.0  ;;  %v1472_v13 = vadd.f32 %v1471_v28, %v2936_v53  ;;  %v1535_v25 = vadd.f32 %v1534_v3, %v1511_v59  ;;  %v1541_v43 = vadd.f32 %v1540_v52, %v3024_v2 }
 0x455   :  { %v1473_v6 = vpop.f32.mrf.mxu1  ;;  %v1572_v55 = vmul.f32 %v3024_v2, %v3024_v2  ;;  %v1596_v45 = vadd.f32 %v1595_v48, %v1571_v34  ;;  %v1567_v58 = vmul.f32 %v1511_v59, %v3013_v26  ;;  %v3074_v28 = vmax.f32 %v2979_v40, 0.0 }
 0x456   :  { %v3042_v50 = vmax.f32 %v1472_v13, 0.0  ;;  %v1474_v63 = vadd.f32 %v1473_v6, %v2936_v53  ;;  %1536 = vadd.xlane.f32.xlu0 %v1535_v25  ;;  %v1517_v23 = vmul.f32 %v2709_v37, %v3031_v35  ;;  %v1565_v53 = vmul.f32 %v3002_v46, %v3002_v46 }
 0x457   :  { %v1597_v57 = vadd.f32 %v1596_v45, %v1572_v55  ;;  %v1558_v52 = vmul.f32 %v2967_v39, %v2967_v39  ;;  %v3078_v48 = vmax.f32 %v1458_v30, 0.0  ;;  %v1526_v9 = vadd.f32 %v1525_v29, %v3074_v28 }
 0x458   :  { %v3050_v27 = vmax.f32 %v1474_v63, 0.0  ;;  %v1542_v33 = vadd.f32 %v1541_v43, %v1517_v23  ;;  %v1573_v7 = vmul.f32 %v1517_v23, %v3031_v35  ;;  %v1548_v42 = vadd.f32 %v1547_v15, %v3042_v50 }
 0x459   :  { %v1578_v61 = vmul.f32 %v3042_v50, %v3042_v50  ;;  %v1589_v12 = vadd.f32 %v1588_v51, %v1565_v53  ;;  %v1581_v59 = vadd.f32 %v2976_v38, %v1558_v52  ;;  %v1559_v40 = vmul.f32 %v3074_v28, %v3074_v28 }
 0x45a   :  { %1543 = vadd.xlane.f32.xlu1 %v1542_v33  ;;  %v1523_v11 = vmul.f32 %v2709_v37, %v3050_v27  ;;  %v1598_v3 = vadd.f32 %v1597_v57, %v1573_v7  ;;  %v1527_v6 = vadd.f32 %v1526_v9, %v3078_v48  ;;  %v1560_v43 = vmul.f32 %v3078_v48, %v3078_v48 }
 0x45b   :  { %v1604_v13 = vadd.f32 %v1603_v0, %v1578_v61  ;;  %v1590_v25 = vadd.f32 %v1589_v12, %v1566_v60  ;;  %v1561_v23 = vmul.f32 %v1505_v44, %v3067_v4  ;;  %v1582_v55 = vadd.f32 %v1581_v59, %v1559_v40 }
 0x45c   :  { %v1549_v14 = vadd.f32 %v1548_v42, %v1523_v11  ;;  %v1579_v17 = vmul.f32 %v1523_v11, %v3050_v27  ;;  %v1528_v63 = vadd.f32 %v1527_v6, %v1505_v44 }
 0x45d   :  { %v1591_v34 = vadd.f32 %v1590_v25, %v1567_v58  ;;  %v1583_v41 = vadd.f32 %v1582_v55, %v1560_v43  ;;  %v1626_v43 = vld [vmem:[%s3183_s9 + $0x10] sm:$0xff] }
 0x45e   :  { %1550 = vadd.xlane.f32.xlu0 %v1549_v14  ;;  %1599 = vadd.xlane.f32.xlu1 %v1598_v3  ;;  %v1605_v49 = vadd.f32 %v1604_v13, %v1579_v17  ;;  %v1642_v55 = vld [vmem:[%s3184_s10 + $0x10] sm:$0xff] }
 0x45f   :  { %v1584_v45 = vadd.f32 %v1583_v41, %v1561_v23 }
 0x462   :  { %1606 = vadd.xlane.f32.xlu0 %v1605_v49  ;;  %1592 = vadd.xlane.f32.xlu1 %v1591_v34 }
 0x466   :  { %1529 = vadd.xlane.f32.xlu0 %v1528_v63 }
 0x46a   :  { %1585 = vadd.xlane.f32.xlu0 %v1584_v45  ;;  %v1625_v45 = vld [vmem:[%s3183_s9 + $0x8] sm:$0xff] }
 0x4df   :  { %v1537_v37 = vpop.xlane.xlu0 %1536 }
 0x4e0   :  { %v1553_v51 = vmul.f32 0.0013550136, %v1537_v37  ;;  %v1627_v37 = vld [vmem:[%s3183_s9 + $0x18] sm:$0xff] }
 0x4e2   :  { %v1613_v60 = vmul.f32 %v1553_v51, %v1553_v51 }
 0x4e3   :  { %v1544_v38 = vpop.xlane.xlu1 %1543 }
 0x4e4   :  { %v1554_v56 = vmul.f32 0.0013550136, %v1544_v38 }
 0x4e6   :  { %v1614_v7 = vmul.f32 %v1554_v56, %v1554_v56 }
 0x4e7   :  { %v1551_v33 = vpop.xlane.xlu0 %1550  ;;  %v1600_v15 = vpop.xlane.xlu1 %1599 }
 0x4e8   :  { %v1555_v53 = vmul.f32 0.0013550136, %v1551_v33  ;;  %v1610_v54 = vmul.f32 0.0013550136, %v1600_v15 }
 0x4ea   :  { %v1618_v30 = vsub.f32 %v1610_v54, %v1614_v7  ;;  %v1615_v57 = vmul.f32 %v1555_v53, %v1555_v53 }
 0x4eb   :  { %v1607_v11 = vpop.xlane.xlu0 %1606  ;;  %v1593_v42 = vpop.xlane.xlu1 %1592 }
 0x4ec   :  { %v1622_v61 = vmax.f32 %v1618_v30, 0.0  ;;  %v1611_v0 = vmul.f32 0.0013550136, %v1607_v11  ;;  %v1609_v12 = vmul.f32 0.0013550136, %v1593_v42  ;;  %v1641_v30 = vld [vmem:[%s3184_s10 + $0x8] sm:$0xff] }
 0x4ed   :  { %v1643_v42 = vld [vmem:[%s3184_s10 + $0x18] sm:$0xff] }
 0x4ee   :  { %v1630_v29 = vadd.f32 1e-05, %v1622_v61  ;;  %v1619_v14 = vsub.f32 %v1611_v0, %v1615_v57  ;;  %v1617_v3 = vsub.f32 %v1609_v12, %v1613_v60  ;;  %v1624_v57 = vld [vmem:[%s3183_s9] sm:$0xff] }
 0x4ef   :  { %v1530_v17 = vpop.xlane.xlu0 %1529  ;;  %v1741_v0 = vld [vmem:[#allocation2] sm:$0x1] }
 0x4f0   :  { %2261 = vrsqrt.f32 %v1630_v29  ;;  %v1623_v58 = vmax.f32 %v1619_v14, 0.0  ;;  %v1621_v52 = vmax.f32 %v1617_v3, 0.0  ;;  %v1552_v13 = vmul.f32 0.0013550136, %v1530_v17 }
 0x4f2   :  { %v1631_v25 = vadd.f32 1e-05, %v1623_v58  ;;  %v1629_v9 = vadd.f32 1e-05, %v1621_v52  ;;  %v1612_v34 = vmul.f32 %v1552_v13, %v1552_v13 }
 0x4f3   :  { %v1586_v49 = vpop.xlane.xlu0 %1585 }
 0x4f4   :  { %2263 = vrsqrt.f32 %v1631_v25  ;;  %v1608_v44 = vmul.f32 0.0013550136, %v1586_v49 }
 0x4f5   :  { %2265 = vrsqrt.f32 %v1629_v9 }
 0x4f6   :  { %v1616_v59 = vsub.f32 %v1608_v44, %v1612_v34 }
 0x4f8   :  { %v1620_v40 = vmax.f32 %v1616_v59, 0.0 }
 0x4fa   :  { %v1628_v6 = vadd.f32 1e-05, %v1620_v40 }
 0x4fc   :  { %2267 = vrsqrt.f32 %v1628_v6 }
 0x4fd   :  { %v2262_v63 = vpop.eup %2261 }
 0x4fe   :  { %v1638_v23 = vmul.f32 %v2262_v63, %v1626_v43 }
 0x500   :  { %1664 = vperm.xlu0 %2197, %v1638_v23   ;;  %v1646_v41 = vmul.f32 %v1638_v23, %v1554_v56 }
 0x501   :  { %v2264_v38 = vpop.eup %2263 }
 0x502   :  { %v2266_v33 = vpop.eup %2265  ;;  %v1650_v15 = vsub.f32 %v1642_v55, %v1646_v41  ;;  %v1639_v54 = vmul.f32 %v2264_v38, %v1627_v37 }
 0x503   :  { %v1637_v7 = vmul.f32 %v2266_v33, %v1625_v45 }
 0x504   :  { %1708 = vperm.xlu0 %2197, %v1650_v15   ;;  %v1647_v11 = vmul.f32 %v1639_v54, %v1555_v53 }
 0x505   :  { %1659 = vperm.xlu1 %2198, %v1637_v7   ;;  %v1645_v56 = vmul.f32 %v1637_v7, %v1553_v51  ;;  %v1640_v51 = vld [vmem:[%s3184_s10] sm:$0xff] }
 0x506   :  { %v1651_v12 = vsub.f32 %v1643_v42, %v1647_v11  ;;  %v1740_v11 = vld [vmem:[%s3185_s11] sm:$0x1]  ;;  %s2294_s11 = smov [#allocation3]  }
 0x507   :  { %v1649_v60 = vsub.f32 %v1641_v30, %v1645_v56  ;;  %s2025_s1 = sshll.u32 %s2294_s11, 4  ;;  %s2026_s1 = int_to_ptr.vmem [resolvable:$true] %s2025_s1 }
 0x508   :  { %s2269_s27 = scalar_lea.vmem %s2026_s1, 96  ;;  %p2274_p1 = scmp.lt.s32.totalorder %s2026_s1, %s2026_s1 }
 0x509   :  { %v2268_v61 = vpop.eup %2267  ;;  %1669 = vperm.xlu1 %2198, %v1639_v54   ;;  %1703 = vperm.xlu0 %2197, %v1649_v60   ;;  %p2270_p0 = scmp.ne.s32.totalorder %s2026_s1, %s2269_s27  ;;  %p2275_p2 = scmp.lt.s32.totalorder %s2269_s27, %s2269_s27 }
 0x50a   :  { %v1636_v29 = vmul.f32 %v2268_v61, %v1624_v57 }
 0x50b   :  { %p2276_p3 = por %p2275_p2, %p2274_p1 }
 0x50c   :  { %v1644_v14 = vmul.f32 %v1636_v29, %v1552_v13 }
 0x50d   :  { %1713 = vperm.xlu1 %2198, %v1651_v12   ;;  %1744 = vperm.xlu0 %2197, %v1741_v0   ;;  %p2277_p4 = pnand %p2276_p3, %p2270_p0 }
 0x50e   :  { %v1648_v53 = vsub.f32 %v1640_v51, %v1644_v14 }
 0x511   :  { %1654 = vperm.xlu1 %2198, %v1636_v29  }
 0x515   :  { %1698 = vperm.xlu1 %2198, %v1648_v53  }
 0x57b   :  { %v3114_v3 = vpop.permute.xlu0 %1664 }
 0x57c   :  { %v1685_v44 = vmul.f32 %v3114_v3, %v2956_v18  ;;  %v1687_v59 = vmul.f32 %v3114_v3, %v3017_v32  ;;  %v1684_v63 = vmul.f32 %v3114_v3, %v2969_v5  ;;  %v1688_v57 = vmul.f32 %v3114_v3, %v3024_v2 }
 0x57f   :  { %v3118_v58 = vpop.permute.xlu0 %1708 }
 0x580   :  { %v3116_v17 = vpop.permute.xlu1 %1659  ;;  %v1728_v18 = vadd.f32 %v3118_v58, %v1684_v63  ;;  %v1732_v61 = vadd.f32 %v3118_v58, %v1688_v57 }
 0x581   :  { %v1679_v32 = vmul.f32 %v3116_v17, %v2947_v10  ;;  %v1681_v55 = vmul.f32 %v3116_v17, %v3002_v46  ;;  %v1678_v45 = vmul.f32 %v3116_v17, %v2953_v16 }
 0x584   :  { %v1670_v52 = vpop.permute.xlu1 %1669 }
 0x585   :  { %v1691_v25 = vmul.f32 %v1670_v52, %v2987_v21  ;;  %v1693_v9 = vmul.f32 %v1670_v52, %v3039_v1  ;;  %v1690_v13 = vmul.f32 %v1670_v52, %v2997_v31  ;;  %v1692_v34 = vmul.f32 %v1670_v52, %v3021_v24  ;;  %v1704_v21 = vpop.permute.xlu0 %1703 }
 0x586   :  { %v1729_v1 = vadd.f32 %v3118_v58, %v1685_v44  ;;  %v1731_v31 = vadd.f32 %v3118_v58, %v1687_v59  ;;  %v1686_v24 = vmul.f32 %v3114_v3, %v2981_v47  ;;  %v1680_v47 = vmul.f32 %v3116_v17, %v2963_v22 }
 0x587   :  { %v1723_v37 = vadd.f32 %v1704_v21, %v1679_v32  ;;  %v1725_v38 = vadd.f32 %v1704_v21, %v1681_v55  ;;  %v1722_v10 = vadd.f32 %v1704_v21, %v1678_v45 }
 0x588   :  { %v1714_v49 = vpop.permute.xlu1 %1713  ;;  %v1730_v41 = vadd.f32 %v3118_v58, %v1686_v24  ;;  %v1724_v33 = vadd.f32 %v1704_v21, %v1680_v47 }
 0x589   :  { %v1735_v40 = vadd.f32 %v1714_v49, %v1691_v25  ;;  %v1737_v6 = vadd.f32 %v1714_v49, %v1693_v9  ;;  %v1734_v43 = vadd.f32 %v1714_v49, %v1690_v13  ;;  %v1736_v23 = vadd.f32 %v1714_v49, %v1692_v34 }
 0x58b   :  { %1778 = vmatprep.subr.mxu0 %v1735_v40  ;;  %1849 = vmatprep.subr.mxu1 %v1737_v6 }
 0x58c   :  { %1779 = vmatpush1.msra.mxu0 %v1734_v43  ;;  %1850 = vmatpush1.msra.mxu1 %v1736_v23  ;;  %v1655_v5 = vpop.permute.xlu1 %1654 }
 0x58d   :  { %1780 = vmatprep.subr.mxu0 %v1729_v1  ;;  %1851 = vmatprep.subr.mxu1 %v1731_v31  ;;  %v1673_v46 = vmul.f32 %v1655_v5, %v2942_v8  ;;  %v1675_v15 = vmul.f32 %v1655_v5, %v3074_v28  ;;  %v1672_v7 = vmul.f32 %v1655_v5, %v2945_v19 }
 0x58e   :  { %1781 = vmatpush1.msra.mxu0 %v1728_v18  ;;  %1852 = vmatpush1.msra.mxu1 %v1730_v41  ;;  %v1674_v16 = vmul.f32 %v1655_v5, %v2967_v39  ;;  %v1695_v8 = vmul.f32 %v1670_v52, %v3050_v27  ;;  %v1694_v28 = vmul.f32 %v1670_v52, %v3042_v50 }
 0x58f   :  { %1782 = vmatprep.subr.mxu0 %v1723_v37  ;;  %1853 = vmatprep.subr.mxu1 %v1725_v38  ;;  %v1689_v39 = vmul.f32 %v3114_v3, %v3031_v35  ;;  %v1683_v50 = vmul.f32 %v3116_v17, %v3013_v26  ;;  %v1682_v35 = vmul.f32 %v3116_v17, %v3004_v20  ;;  %v2293_v20 = vmov 1966171168   ;;  %v1745_v3 = vpop.permute.xlu0 %1744 }
 0x590   :  { %v1699_v54 = vpop.permute.xlu1 %1698  ;;  %1783 = vmatpush1.msra.mxu0 %v1722_v10  ;;  %1854 = vmatpush1.msra.mxu1 %v1724_v33  ;;  %v1739_v19 = vadd.f32 %v1714_v49, %v1695_v8  ;;  %v1738_v42 = vadd.f32 %v1714_v49, %v1694_v28  ;;  %v1677_v12 = vmul.f32 %v1655_v5, %v3067_v4  ;;  %v1977_v53 = vunpack.c.l.s4 %v2293_v20 }
 0x591   :  { %v1717_v22 = vadd.f32 %v1699_v54, %v1673_v46  ;;  %v1719_v30 = vadd.f32 %v1699_v54, %v1675_v15  ;;  %v1716_v56 = vadd.f32 %v1699_v54, %v1672_v7  ;;  %v1718_v60 = vadd.f32 %v1699_v54, %v1674_v16 }
 0x592   :  { %v1733_v27 = vadd.f32 %v3118_v58, %v1689_v39  ;;  %v1727_v0 = vadd.f32 %v1704_v21, %v1683_v50  ;;  %v1726_v2 = vadd.f32 %v1704_v21, %v1682_v35  ;;  %v1676_v29 = vmul.f32 %v1655_v5, %v3078_v48 }
 0x593   :  { %1784 = vmatprep.subr.mxu0 %v1717_v22  ;;  %1855 = vmatprep.subr.mxu1 %v1719_v30  ;;  %v1721_v14 = vadd.f32 %v1699_v54, %v1677_v12  ;;  %v1978_v52 = vunpack.c.0.s8 %v1977_v53 }
 0x594   :  { %1785 = vmatpush1.msra.mxu0 %v1716_v56  ;;  %1856 = vmatpush1.msra.mxu1 %v1718_v60  ;;  %v1720_v26 = vadd.f32 %v1699_v54, %v1676_v29 }
 0x595   :  { %2106 = vmatmul.mubr.msk.f32.vlgmr.msra.gmra.mxu0 %vm806_vm1, %v1740_v11  ;;  %2107 = vmatmul.mubr.msk.f32.vlgmr.msra.gmra.mxu1 %vm806_vm1, %v1740_v11 }
 0x596   :  { %1920 = vmatprep.subr.mxu0 %v1739_v19  ;;  %1960 = vmatprep.mubr.f32.mxu0 %v2292_v36  ;;  %v1748_v36 = vshrl.u32 %v996_v62, 7 }
 0x597   :  { %1921 = vmatpush1.msra.mxu0 %v1738_v42 }
 0x598   :  { %1922 = vmatprep.subr.mxu0 %v1733_v27  ;;  %v1749_v51 = vsub.s32 0, %v1748_v36  ;;  %v1981_v44 = vsub.s32 %v1978_v52, %v1748_v36 }
 0x599   :  { %1923 = vmatpush1.msra.mxu0 %v1732_v61 }
 0x59a   :  { %1924 = vmatprep.subr.mxu0 %v1727_v0  ;;  %v1750_v58 = vrot.slane %v1745_v3, %v1749_v51 }
 0x59b   :  { %1925 = vmatpush1.msra.mxu0 %v1726_v2 }
 0x59c   :  { %1926 = vmatprep.subr.mxu0 %v1721_v14 }
 0x59d   :  { %1927 = vmatpush1.msra.mxu0 %v1720_v26 }
 0x59e   :  { %2108 = vmatmul.mubr.msk.f32.vlgmr.msra.gmra.mxu0 %vm806_vm1, %v1740_v11 }
 0x655   :  { %v1820_v17 = vpop.f32.mrf.mxu0  ;;  %v1891_v4 = vpop.f32.mrf.mxu1 }
 0x656   :  { %v1821_v49 = vadd.f32 %v1820_v17, %v1750_v58  ;;  %v1892_v34 = vadd.f32 %v1891_v4, %v1750_v58 }
 0x657   :  { %v1822_v25 = vpop.f32.mrf.mxu0  ;;  %v1893_v48 = vpop.f32.mrf.mxu1 }
 0x658   :  { %v1823_v9 = vadd.f32 %v1822_v25, %v1750_v58  ;;  %v1894_v13 = vadd.f32 %v1893_v48, %v1750_v58 }
 0x65a   :  { %v1973_v59 = vcombine.low %v1821_v49, %v1823_v9  ;;  %v1974_v40 = vcombine.low %v1892_v34, %v1894_v13 }
 0x65c   :  { %v1982_v43 = vrot.slane %v1973_v59, %v1981_v44  ;;  %v1989_v63 = vrot.slane %v1974_v40, %v1981_v44 }
 0x65e   :  { %v1962_v6 = vpop.f32.mrf.mxu0  ;;  %v1997_v31 = vcombine.low %v1982_v43, %v1989_v63 }
 0x65f   :  { %v1963_v23 = vadd.f32 %v1962_v6, %v1750_v58 }
 0x660   :  { %v1964_v21 = vpop.f32.mrf.mxu0  ;;  %v2004_v32 = vrot.slane %v1997_v31, %v1981_v44 }
 0x661   :  { %v1965_v1 = vadd.f32 %v1964_v21, %v1750_v58 }
 0x663   :  { %v1975_v24 = vcombine.low %v1963_v23, %v1965_v1 }
 0x665   :  { %v1996_v18 = vrot.slane %v1975_v24, %v1981_v44 }
 0x667   :  { %v2011_v55 = vrot.slane %v1996_v18, %v1981_v44 }
 0x669   :  { %v2012_v5 = vcombine.low %v2004_v32, %v2011_v55 }
 0x66b   :  { %2018 = vst.msk [vmem:[#allocation3] sm:$0x3f] %vm2016_vm3, %v2012_v5 }
 0x66c   :  { %2280 = shalt.err (!%p2277_p4)
}
 0x66d   :  { %2028 = dma.vmem_to_hbm [thread:$0]  %s2026_s1, 96, %s3187_s13, [#allocation4]  }
 0x66e   :  { %2289 = dma.done.wait [#allocation4], 96  }
 0x66f   :  { %2290 = vsyncadd [#allocation4], 4294967200 }
 0x670   :  { %2032 = vsyncpa [#allocation4], 1 }

</bundles_post_ra>
